<compile_context>
chip_gen: v7x
topology: tpu7x:2x2x1
jax: 0.10.0
libtpu: 0.0.40
codegen_flags: <defaults>
</compile_context>

<pallas_src>
import functools

import jax
import jax.numpy as jnp
from jax.experimental import pallas as pl
from jax.experimental.pallas import tpu as pltpu


def _round_up(a, b):
    return (a + b - 1) // b * b


def _spatial_block_kernel(x_ref, w_ref, g_ref, b_ref, o_ref, sum_ref, sumsq_ref,
                          *, stride, wout, m_count, eps, fold_scale):
    """Two-sweep fused conv + BN(train) + ReLU.

    x_ref : (Cin, W, tile_R)      conv input tile (R = N*H on lanes)
    w_ref : (Cin, Cout, K)        conv weights (per-ci MXU LHS tiles)
    g_ref : (Cout, 1) f32         BN gamma
    b_ref : (Cout, 1) f32         BN beta
    o_ref : (Wout, Cout, tile_R)  output tile -> full-width lane-dense stores
    sum_ref / sumsq_ref : (Cout, 1) f32 VMEM scratch, persist across the grid
    """
    sweep = pl.program_id(0)        # 0 = accumulate global stats, 1 = normalize + store
    tile = pl.program_id(1)

    cin = x_ref.shape[0]
    cout = o_ref.shape[1]
    tile_r = o_ref.shape[2]
    ksz = w_ref.shape[2]

    @pl.when(jnp.logical_and(sweep == 0, tile == 0))
    def _init():
        sum_ref[...] = jnp.zeros_like(sum_ref)
        sumsq_ref[...] = jnp.zeros_like(sumsq_ref)

    # Hoist the tiny (Cout, K) weight tiles out of the window loops.
    w_k = [w_ref[ci] for ci in range(cin)]

    def conv_slab(wo, wk_list):
        # Conv output for one window position wo: (Cout, tile_R), f32 accum.
        # No conv bias: BN's mean subtraction cancels it exactly.
        acc = jnp.zeros((cout, tile_r), jnp.float32)
        for ci in range(cin):
            xk = x_ref[ci, pl.ds(wo * stride, ksz), :]          # (K, tile_R)
            acc = acc + jnp.dot(wk_list[ci], xk,
                                preferred_element_type=jnp.float32)
        return acc

    @pl.when(sweep == 0)
    def _stats():
        # Accumulate full-width running sums (VPU), lane-reduce (XLU) only once
        # per tile per statistic instead of per window.
        ty = jnp.zeros((cout, tile_r), jnp.float32)
        tysq = jnp.zeros((cout, tile_r), jnp.float32)
        for wo in range(wout):
            y = conv_slab(wo, w_k)
            ty = ty + y
            tysq = tysq + y * y
        sum_ref[...] += jnp.sum(ty, axis=1, keepdims=True)
        sumsq_ref[...] += jnp.sum(tysq, axis=1, keepdims=True)

    @pl.when(sweep == 1)
    def _normalize():
        inv_m = 1.0 / m_count                                   # true count (no padding)
        mean = sum_ref[...] * inv_m                              # (Cout, 1)
        var = sumsq_ref[...] * inv_m - mean * mean               # biased var, as BN
        scale = g_ref[...] * jax.lax.rsqrt(var + eps)            # (Cout, 1), EUP rsqrt
        shift = b_ref[...] - mean * scale                        # (Cout, 1)
        # Hoist the lane broadcast out of the window loop (no CSE of broadcasts).
        shift_b = jnp.broadcast_to(shift, (cout, tile_r))
        if fold_scale:
            # f32 path: fold the BN scale into the tiny conv weights -> saves a
            # full-width (Cout, tile_R) multiply per window.
            wk_s = [(scale * w_k[ci].astype(jnp.float32)).astype(x_ref.dtype)
                    for ci in range(cin)]
            for wo in range(wout):
                y = conv_slab(wo, wk_s)
                o_ref[wo, :, :] = jnp.maximum(y + shift_b, 0.0).astype(o_ref.dtype)
        else:
            # bf16 path: keep the quantized weights untouched; scale post-conv.
            scale_b = jnp.broadcast_to(scale, (cout, tile_r))
            for wo in range(wout):
                y = conv_slab(wo, w_k)
                o_ref[wo, :, :] = jnp.maximum(y * scale_b + shift_b,
                                              0.0).astype(o_ref.dtype)


def spatial_block(x, conv_w, conv_b, bn_gamma, bn_beta, *, kernel_size, stride,
                  compute_dtype=jnp.float32, eps=1e-5):
    """x: (N, Cin, H, W) f32.  conv_w: (Cout, Cin, 1, K).  Returns (N, Cout, H, Wout).

    conv_b is accepted for interface parity with the PyTorch module but is never
    used: the training-mode BatchNorm that follows subtracts the per-channel
    batch mean, which cancels the conv bias exactly.
    """
    del conv_b
    N, Cin, H, W = x.shape
    Cout = conv_w.shape[0]
    K, S = kernel_size, stride
    assert conv_w.shape == (Cout, Cin, 1, K)
    Wout = (W - K) // S + 1
    R = N * H

    # ---- tile-size / padding selection (lane dim = R, multiples of 128) -------
    LANE = 128
    itemsize = jnp.dtype(compute_dtype).itemsize
    # Double-buffered input block + f32 output block + stat accumulators, per
    # lane of tile_R.
    bytes_per_lane = (2 * (Cin * W * itemsize + Wout * Cout * 4)
                      + 2 * Cout * 4)
    vmem_budget = 16 * 1024 * 1024          # headroom for v7x (64 MiB physical VMEM)
    tile_r = min(_round_up(R, LANE),
                 max(LANE, (vmem_budget // bytes_per_lane) // LANE * LANE))
    R_pad = _round_up(R, tile_r)
    n_tiles = R_pad // tile_r

    # ---- wrapper-side layout plumbing (no im2col, no data inflation) ----------
    # (N, Cin, H, W) -> (Cin, W, R) with R = N*H minor (lanes); zero-pad R.
    # Padded rows produce conv output 0 (no bias), so they add exactly 0 to the
    # BN sums; the true count m_count keeps the statistics exact.
    xw = jnp.transpose(x, (1, 3, 0, 2)).reshape(Cin, W, R)
    xw = jnp.pad(xw, ((0, 0), (0, 0), (0, R_pad - R))).astype(compute_dtype)

    # (Cout, Cin, 1, K) -> (Cin, Cout, K): one (Cout, K) MXU LHS per input channel.
    w_mat = jnp.transpose(conv_w.reshape(Cout, Cin, K), (1, 0, 2)).astype(compute_dtype)

    g_col = bn_gamma.reshape(Cout, 1).astype(jnp.float32)
    b_col = bn_beta.reshape(Cout, 1).astype(jnp.float32)

    m_count = float(N * H * Wout)           # true BN element count per channel
    fold_scale = jnp.dtype(compute_dtype) == jnp.dtype(jnp.float32)

    kernel = functools.partial(_spatial_block_kernel, stride=S, wout=Wout,
                               m_count=m_count, eps=eps, fold_scale=fold_scale)

    flops = 2 * 2 * R_pad * Wout * Cout * Cin * K            # conv done in both sweeps
    bytes_accessed = int(2 * xw.size * itemsize + w_mat.size * itemsize
                         + (g_col.size + b_col.size) * 4 + Wout * Cout * R_pad * 4)

    out_wcr = pl.pallas_call(
        kernel,
        out_shape=jax.ShapeDtypeStruct((Wout, Cout, R_pad), jnp.float32),
        grid_spec=pltpu.PrefetchScalarGridSpec(
            num_scalar_prefetch=0,
            grid=(2, n_tiles),                               # (sweep, R tile)
            in_specs=[
                pl.BlockSpec((Cin, W, tile_r), lambda s, i: (0, 0, i)),
                pl.BlockSpec((Cin, Cout, K), lambda s, i: (0, 0, 0)),
                pl.BlockSpec((Cout, 1), lambda s, i: (0, 0)),
                pl.BlockSpec((Cout, 1), lambda s, i: (0, 0)),
            ],
            # Sweep 0 (stats) never writes the output; mapping it to block 0
            # keeps the unwritten buffer resident (no garbage copy-out).  Sweep 1
            # then walks and writes every block exactly once.
            out_specs=pl.BlockSpec((Wout, Cout, tile_r),
                                   lambda s, i: (0, 0, s * i)),
            scratch_shapes=[pltpu.VMEM((Cout, 1), jnp.float32),   # sum
                            pltpu.VMEM((Cout, 1), jnp.float32)],  # sum of squares
        ),
        compiler_params=pltpu.CompilerParams(
            # Both axes are sequential: sweep 1 consumes scratch written in sweep 0.
            # TODO(synk): on v7x, per-core partial stats + a tiny cross-core combine
            # would let the R axis run "parallel" across the two TensorCores.
            dimension_semantics=("arbitrary", "arbitrary"),
            vmem_limit_bytes=32 * 1024 * 1024,
        ),
        cost_estimate=pl.CostEstimate(flops=int(flops),
                                      transcendentals=int(Cout * n_tiles),
                                      bytes_accessed=bytes_accessed),
    )(xw, w_mat, g_col, b_col)

    # (Wout, Cout, R_pad) -> (N, Cout, H, Wout): pure layout plumbing in XLA.
    out = out_wcr[:, :, :R]
    out = jnp.transpose(out, (2, 1, 0)).reshape(N, H, Cout, Wout)
    return jnp.transpose(out, (0, 2, 1, 3))


def _reference(x, conv_w, conv_b, bn_gamma, bn_beta, *, stride, eps=1e-5):
    y = jax.lax.conv_general_dilated(
        x, conv_w, window_strides=(1, stride), padding="VALID",
        dimension_numbers=("NCHW", "OIHW", "NCHW"))
    y = y + conv_b.reshape(1, -1, 1, 1)
    mean = jnp.mean(y, axis=(0, 2, 3), keepdims=True)
    var = jnp.mean((y - mean) ** 2, axis=(0, 2, 3), keepdims=True)
    y = (y - mean) * jax.lax.rsqrt(var + eps)
    y = y * bn_gamma.reshape(1, -1, 1, 1) + bn_beta.reshape(1, -1, 1, 1)
    return jnp.maximum(y, 0.0)


if __name__ == "__main__":
    # Small shapes consistent with the module's forward.
    N, Cin, H, W = 2, 4, 16, 16
    Cout, K, S = 8, 4, 2

    key = jax.random.PRNGKey(0)
    k1, k2, k3, k4 = jax.random.split(key, 4)

    x = jax.random.normal(k1, (N, Cin, H, W), dtype=jnp.float32)
    conv_w = jax.random.normal(k2, (Cout, Cin, 1, K), dtype=jnp.float32) * 0.1
    conv_b = jax.random.normal(k3, (Cout,), dtype=jnp.float32) * 0.1
    bn_gamma = jnp.ones((Cout,), dtype=jnp.float32) + 0.1 * jax.random.normal(
        k4, (Cout,), dtype=jnp.float32)
    bn_beta = jnp.linspace(-0.1, 0.1, Cout, dtype=jnp.float32)

    Wout = (W - K) // S + 1

    # f32 path: exact module semantics.
    out = spatial_block(x, conv_w, conv_b, bn_gamma, bn_beta,
                        kernel_size=K, stride=S)
    out = jax.block_until_ready(out)
    ref = _reference(x, conv_w, conv_b, bn_gamma, bn_beta, stride=S)
    assert out.shape == (N, Cout, H, Wout)
    assert jnp.allclose(out, ref, atol=1e-4, rtol=1e-4), \
        float(jnp.max(jnp.abs(out - ref)))

    # bf16 MXU-input path (v6e/v5e bandwidth optimization; BN math stays f32).
    # Compared against a reference fed the identically bf16-quantized inputs.
    out_bf16 = spatial_block(x, conv_w, conv_b, bn_gamma, bn_beta,
                             kernel_size=K, stride=S,
                             compute_dtype=jnp.bfloat16)
    out_bf16 = jax.block_until_ready(out_bf16)
    ref_bf16 = _reference(x.astype(jnp.bfloat16).astype(jnp.float32),
                          conv_w.astype(jnp.bfloat16).astype(jnp.float32),
                          conv_b, bn_gamma, bn_beta, stride=S)
    assert jnp.allclose(out_bf16, ref_bf16, atol=2e-3, rtol=2e-3), \
        float(jnp.max(jnp.abs(out_bf16 - ref_bf16)))

    print("KERNEL_OK")
</pallas_src>

<mosaic_0001>
module attributes {stable_mosaic.version = 11 : i64} {
  func.func @_spatial_block_kernel(%arg0: i32, %arg1: i32, %arg2: memref<4x16x128xf32, #tpu.memory_space<vmem>>, %arg3: memref<4x8x4xf32, #tpu.memory_space<vmem>>, %arg4: memref<8x1xf32, #tpu.memory_space<vmem>>, %arg5: memref<8x1xf32, #tpu.memory_space<vmem>>, %arg6: memref<7x8x128xf32, #tpu.memory_space<vmem>>, %arg7: memref<8x1xf32, #tpu.memory_space<vmem>>, %arg8: memref<8x1xf32, #tpu.memory_space<vmem>>) attributes {dimension_semantics = [#tpu.dimension_semantics<arbitrary>, #tpu.dimension_semantics<arbitrary>], iteration_bounds = array<i64: 2, 1>, scalar_prefetch = 0 : i64, scratch_operands = 2 : i64, tpu.core_type = #tpu.core_type<tc>, window_params = [{transform_indices = @transform_0, window_bounds = array<i64: 4, 16, 128>}, {pipeline_mode = #tpu.pipeline_mode<synchronous>, transform_indices = @transform_1, window_bounds = array<i64: 4, 8, 4>}, {pipeline_mode = #tpu.pipeline_mode<synchronous>, transform_indices = @transform_2, window_bounds = array<i64: 8, 1>}, {pipeline_mode = #tpu.pipeline_mode<synchronous>, transform_indices = @transform_3, window_bounds = array<i64: 8, 1>}, {transform_indices = @transform_4, window_bounds = array<i64: 7, 8, 128>}]} {
    %c0_i32 = arith.constant 0 : i32
    %0 = arith.cmpi eq, %arg0, %c0_i32 : i32
    %c0_i32_0 = arith.constant 0 : i32
    %1 = arith.cmpi eq, %arg1, %c0_i32_0 : i32
    %2 = arith.andi %0, %1 : i1
    %3 = arith.extui %2 : i1 to i32
    %c0_i32_1 = arith.constant 0 : i32
    %4 = arith.cmpi ne, %3, %c0_i32_1 : i32
    scf.if %4 {
      %cst = arith.constant 0.000000e+00 : f32
      %19 = vector.broadcast %cst : f32 to vector<8x1xf32>
      %c0_13 = arith.constant 0 : index
      %c0_14 = arith.constant 0 : index
      %20 = vector.load %arg7[%c0_13, %c0_14] : memref<8x1xf32, #tpu.memory_space<vmem>>, vector<8x1xf32>
      tpu.vector_store %arg7[%c0_13, %c0_14], %19 {strides = array<i32>} : memref<8x1xf32, #tpu.memory_space<vmem>>, vector<8x1xf32>,
      %cst_15 = arith.constant 0.000000e+00 : f32
      %21 = vector.broadcast %cst_15 : f32 to vector<8x1xf32>
      %c0_16 = arith.constant 0 : index
      %c0_17 = arith.constant 0 : index
      %22 = vector.load %arg8[%c0_16, %c0_17] : memref<8x1xf32, #tpu.memory_space<vmem>>, vector<8x1xf32>
      tpu.vector_store %arg8[%c0_16, %c0_17], %21 {strides = array<i32>} : memref<8x1xf32, #tpu.memory_space<vmem>>, vector<8x1xf32>,
    } else {
    }
    %c0 = arith.constant 0 : index
    %c0_2 = arith.constant 0 : index
    %c0_3 = arith.constant 0 : index
    %5 = vector.load %arg3[%c0, %c0_2, %c0_3] : memref<4x8x4xf32, #tpu.memory_space<vmem>>, vector<1x8x4xf32>
    %6 = vector.shape_cast %5 : vector<1x8x4xf32> to vector<8x4xf32>
    %c1 = arith.constant 1 : index
    %c0_4 = arith.constant 0 : index
    %c0_5 = arith.constant 0 : index
    %7 = vector.load %arg3[%c1, %c0_4, %c0_5] : memref<4x8x4xf32, #tpu.memory_space<vmem>>, vector<1x8x4xf32>
    %8 = vector.shape_cast %7 : vector<1x8x4xf32> to vector<8x4xf32>
    %c2 = arith.constant 2 : index
    %c0_6 = arith.constant 0 : index
    %c0_7 = arith.constant 0 : index
    %9 = vector.load %arg3[%c2, %c0_6, %c0_7] : memref<4x8x4xf32, #tpu.memory_space<vmem>>, vector<1x8x4xf32>
    %10 = vector.shape_cast %9 : vector<1x8x4xf32> to vector<8x4xf32>
    %c3 = arith.constant 3 : index
    %c0_8 = arith.constant 0 : index
    %c0_9 = arith.constant 0 : index
    %11 = vector.load %arg3[%c3, %c0_8, %c0_9] : memref<4x8x4xf32, #tpu.memory_space<vmem>>, vector<1x8x4xf32>
    %12 = vector.shape_cast %11 : vector<1x8x4xf32> to vector<8x4xf32>
    %c0_i32_10 = arith.constant 0 : i32
    %13 = arith.cmpi eq, %arg0, %c0_i32_10 : i32
    %14 = arith.extui %13 : i1 to i32
    %c0_i32_11 = arith.constant 0 : i32
    %15 = arith.cmpi ne, %14, %c0_i32_11 : i32
    scf.if %15 {
      %cst = arith.constant 0.000000e+00 : f32
      %19 = vector.broadcast %cst : f32 to vector<8x128xf32>
      %cst_13 = arith.constant 0.000000e+00 : f32
      %20 = vector.broadcast %cst_13 : f32 to vector<8x128xf32>
      %cst_14 = arith.constant 0.000000e+00 : f32
      %21 = vector.broadcast %cst_14 : f32 to vector<8x128xf32>
      %c0_15 = arith.constant 0 : index
      %c0_16 = arith.constant 0 : index
      %c0_17 = arith.constant 0 : index
      %22 = vector.load %arg2[%c0_15, %c0_16, %c0_17] : memref<4x16x128xf32, #tpu.memory_space<vmem>>, vector<1x4x128xf32>
      %23 = vector.shape_cast %22 : vector<1x4x128xf32> to vector<4x128xf32>
      %cst_18 = arith.constant dense<0.000000e+00> : vector<8x128xf32>
      %24 = tpu.matmul %6, %23, %cst_18 {dimension_numbers = #tpu.dot_dimension_numbers<[1], [0], [0], [1], [0, 0, 1, 1], [], []>} : vector<8x4xf32>, vector<4x128xf32>, vector<8x128xf32> -> vector<8x128xf32>
      %25 = arith.addf %21, %24 : vector<8x128xf32>
      %c1_19 = arith.constant 1 : index
      %c0_20 = arith.constant 0 : index
      %c0_21 = arith.constant 0 : index
      %26 = vector.load %arg2[%c1_19, %c0_20, %c0_21] : memref<4x16x128xf32, #tpu.memory_space<vmem>>, vector<1x4x128xf32>
      %27 = vector.shape_cast %26 : vector<1x4x128xf32> to vector<4x128xf32>
      %cst_22 = arith.constant dense<0.000000e+00> : vector<8x128xf32>
      %28 = tpu.matmul %8, %27, %cst_22 {dimension_numbers = #tpu.dot_dimension_numbers<[1], [0], [0], [1], [0, 0, 1, 1], [], []>} : vector<8x4xf32>, vector<4x128xf32>, vector<8x128xf32> -> vector<8x128xf32>
      %29 = arith.addf %25, %28 : vector<8x128xf32>
      %c2_23 = arith.constant 2 : index
      %c0_24 = arith.constant 0 : index
      %c0_25 = arith.constant 0 : index
      %30 = vector.load %arg2[%c2_23, %c0_24, %c0_25] : memref<4x16x128xf32, #tpu.memory_space<vmem>>, vector<1x4x128xf32>
      %31 = vector.shape_cast %30 : vector<1x4x128xf32> to vector<4x128xf32>
      %cst_26 = arith.constant dense<0.000000e+00> : vector<8x128xf32>
      %32 = tpu.matmul %10, %31, %cst_26 {dimension_numbers = #tpu.dot_dimension_numbers<[1], [0], [0], [1], [0, 0, 1, 1], [], []>} : vector<8x4xf32>, vector<4x128xf32>, vector<8x128xf32> -> vector<8x128xf32>
      %33 = arith.addf %29, %32 : vector<8x128xf32>
      %c3_27 = arith.constant 3 : index
      %c0_28 = arith.constant 0 : index
      %c0_29 = arith.constant 0 : index
      %34 = vector.load %arg2[%c3_27, %c0_28, %c0_29] : memref<4x16x128xf32, #tpu.memory_space<vmem>>, vector<1x4x128xf32>
      %35 = vector.shape_cast %34 : vector<1x4x128xf32> to vector<4x128xf32>
      %cst_30 = arith.constant dense<0.000000e+00> : vector<8x128xf32>
      %36 = tpu.matmul %12, %35, %cst_30 {dimension_numbers = #tpu.dot_dimension_numbers<[1], [0], [0], [1], [0, 0, 1, 1], [], []>} : vector<8x4xf32>, vector<4x128xf32>, vector<8x128xf32> -> vector<8x128xf32>
      %37 = arith.addf %33, %36 : vector<8x128xf32>
      %38 = arith.addf %19, %37 : vector<8x128xf32>
      %39 = arith.mulf %37, %37 : vector<8x128xf32>
      %40 = arith.addf %20, %39 : vector<8x128xf32>
      %cst_31 = arith.constant 0.000000e+00 : f32
      %41 = vector.broadcast %cst_31 : f32 to vector<8x128xf32>
      %c0_32 = arith.constant 0 : index
      %c2_33 = arith.constant 2 : index
      %c0_34 = arith.constant 0 : index
      %42 = vector.load %arg2[%c0_32, %c2_33, %c0_34] : memref<4x16x128xf32, #tpu.memory_space<vmem>>, vector<1x4x128xf32>
      %43 = vector.shape_cast %42 : vector<1x4x128xf32> to vector<4x128xf32>
      %cst_35 = arith.constant dense<0.000000e+00> : vector<8x128xf32>
      %44 = tpu.matmul %6, %43, %cst_35 {dimension_numbers = #tpu.dot_dimension_numbers<[1], [0], [0], [1], [0, 0, 1, 1], [], []>} : vector<8x4xf32>, vector<4x128xf32>, vector<8x128xf32> -> vector<8x128xf32>
      %45 = arith.addf %41, %44 : vector<8x128xf32>
      %c1_36 = arith.constant 1 : index
      %c2_37 = arith.constant 2 : index
      %c0_38 = arith.constant 0 : index
      %46 = vector.load %arg2[%c1_36, %c2_37, %c0_38] : memref<4x16x128xf32, #tpu.memory_space<vmem>>, vector<1x4x128xf32>
      %47 = vector.shape_cast %46 : vector<1x4x128xf32> to vector<4x128xf32>
      %cst_39 = arith.constant dense<0.000000e+00> : vector<8x128xf32>
      %48 = tpu.matmul %8, %47, %cst_39 {dimension_numbers = #tpu.dot_dimension_numbers<[1], [0], [0], [1], [0, 0, 1, 1], [], []>} : vector<8x4xf32>, vector<4x128xf32>, vector<8x128xf32> -> vector<8x128xf32>
      %49 = arith.addf %45, %48 : vector<8x128xf32>
      %c2_40 = arith.constant 2 : index
      %c2_41 = arith.constant 2 : index
      %c0_42 = arith.constant 0 : index
      %50 = vector.load %arg2[%c2_40, %c2_41, %c0_42] : memref<4x16x128xf32, #tpu.memory_space<vmem>>, vector<1x4x128xf32>
      %51 = vector.shape_cast %50 : vector<1x4x128xf32> to vector<4x128xf32>
      %cst_43 = arith.constant dense<0.000000e+00> : vector<8x128xf32>
      %52 = tpu.matmul %10, %51, %cst_43 {dimension_numbers = #tpu.dot_dimension_numbers<[1], [0], [0], [1], [0, 0, 1, 1], [], []>} : vector<8x4xf32>, vector<4x128xf32>, vector<8x128xf32> -> vector<8x128xf32>
      %53 = arith.addf %49, %52 : vector<8x128xf32>
      %c3_44 = arith.constant 3 : index
      %c2_45 = arith.constant 2 : index
      %c0_46 = arith.constant 0 : index
      %54 = vector.load %arg2[%c3_44, %c2_45, %c0_46] : memref<4x16x128xf32, #tpu.memory_space<vmem>>, vector<1x4x128xf32>
      %55 = vector.shape_cast %54 : vector<1x4x128xf32> to vector<4x128xf32>
      %cst_47 = arith.constant dense<0.000000e+00> : vector<8x128xf32>
      %56 = tpu.matmul %12, %55, %cst_47 {dimension_numbers = #tpu.dot_dimension_numbers<[1], [0], [0], [1], [0, 0, 1, 1], [], []>} : vector<8x4xf32>, vector<4x128xf32>, vector<8x128xf32> -> vector<8x128xf32>
      %57 = arith.addf %53, %56 : vector<8x128xf32>
      %58 = arith.addf %38, %57 : vector<8x128xf32>
      %59 = arith.mulf %57, %57 : vector<8x128xf32>
      %60 = arith.addf %40, %59 : vector<8x128xf32>
      %cst_48 = arith.constant 0.000000e+00 : f32
      %61 = vector.broadcast %cst_48 : f32 to vector<8x128xf32>
      %c0_49 = arith.constant 0 : index
      %c4 = arith.constant 4 : index
      %c0_50 = arith.constant 0 : index
      %62 = vector.load %arg2[%c0_49, %c4, %c0_50] : memref<4x16x128xf32, #tpu.memory_space<vmem>>, vector<1x4x128xf32>
      %63 = vector.shape_cast %62 : vector<1x4x128xf32> to vector<4x128xf32>
      %cst_51 = arith.constant dense<0.000000e+00> : vector<8x128xf32>
      %64 = tpu.matmul %6, %63, %cst_51 {dimension_numbers = #tpu.dot_dimension_numbers<[1], [0], [0], [1], [0, 0, 1, 1], [], []>} : vector<8x4xf32>, vector<4x128xf32>, vector<8x128xf32> -> vector<8x128xf32>
      %65 = arith.addf %61, %64 : vector<8x128xf32>
      %c1_52 = arith.constant 1 : index
      %c4_53 = arith.constant 4 : index
      %c0_54 = arith.constant 0 : index
      %66 = vector.load %arg2[%c1_52, %c4_53, %c0_54] : memref<4x16x128xf32, #tpu.memory_space<vmem>>, vector<1x4x128xf32>
      %67 = vector.shape_cast %66 : vector<1x4x128xf32> to vector<4x128xf32>
      %cst_55 = arith.constant dense<0.000000e+00> : vector<8x128xf32>
      %68 = tpu.matmul %8, %67, %cst_55 {dimension_numbers = #tpu.dot_dimension_numbers<[1], [0], [0], [1], [0, 0, 1, 1], [], []>} : vector<8x4xf32>, vector<4x128xf32>, vector<8x128xf32> -> vector<8x128xf32>
      %69 = arith.addf %65, %68 : vector<8x128xf32>
      %c2_56 = arith.constant 2 : index
      %c4_57 = arith.constant 4 : index
      %c0_58 = arith.constant 0 : index
      %70 = vector.load %arg2[%c2_56, %c4_57, %c0_58] : memref<4x16x128xf32, #tpu.memory_space<vmem>>, vector<1x4x128xf32>
      %71 = vector.shape_cast %70 : vector<1x4x128xf32> to vector<4x128xf32>
      %cst_59 = arith.constant dense<0.000000e+00> : vector<8x128xf32>
      %72 = tpu.matmul %10, %71, %cst_59 {dimension_numbers = #tpu.dot_dimension_numbers<[1], [0], [0], [1], [0, 0, 1, 1], [], []>} : vector<8x4xf32>, vector<4x128xf32>, vector<8x128xf32> -> vector<8x128xf32>
      %73 = arith.addf %69, %72 : vector<8x128xf32>
      %c3_60 = arith.constant 3 : index
      %c4_61 = arith.constant 4 : index
      %c0_62 = arith.constant 0 : index
      %74 = vector.load %arg2[%c3_60, %c4_61, %c0_62] : memref<4x16x128xf32, #tpu.memory_space<vmem>>, vector<1x4x128xf32>
      %75 = vector.shape_cast %74 : vector<1x4x128xf32> to vector<4x128xf32>
      %cst_63 = arith.constant dense<0.000000e+00> : vector<8x128xf32>
      %76 = tpu.matmul %12, %75, %cst_63 {dimension_numbers = #tpu.dot_dimension_numbers<[1], [0], [0], [1], [0, 0, 1, 1], [], []>} : vector<8x4xf32>, vector<4x128xf32>, vector<8x128xf32> -> vector<8x128xf32>
      %77 = arith.addf %73, %76 : vector<8x128xf32>
      %78 = arith.addf %58, %77 : vector<8x128xf32>
      %79 = arith.mulf %77, %77 : vector<8x128xf32>
      %80 = arith.addf %60, %79 : vector<8x128xf32>
      %cst_64 = arith.constant 0.000000e+00 : f32
      %81 = vector.broadcast %cst_64 : f32 to vector<8x128xf32>
      %c0_65 = arith.constant 0 : index
      %c6 = arith.constant 6 : index
      %c0_66 = arith.constant 0 : index
      %82 = vector.load %arg2[%c0_65, %c6, %c0_66] : memref<4x16x128xf32, #tpu.memory_space<vmem>>, vector<1x4x128xf32>
      %83 = vector.shape_cast %82 : vector<1x4x128xf32> to vector<4x128xf32>
      %cst_67 = arith.constant dense<0.000000e+00> : vector<8x128xf32>
      %84 = tpu.matmul %6, %83, %cst_67 {dimension_numbers = #tpu.dot_dimension_numbers<[1], [0], [0], [1], [0, 0, 1, 1], [], []>} : vector<8x4xf32>, vector<4x128xf32>, vector<8x128xf32> -> vector<8x128xf32>
      %85 = arith.addf %81, %84 : vector<8x128xf32>
      %c1_68 = arith.constant 1 : index
      %c6_69 = arith.constant 6 : index
      %c0_70 = arith.constant 0 : index
      %86 = vector.load %arg2[%c1_68, %c6_69, %c0_70] : memref<4x16x128xf32, #tpu.memory_space<vmem>>, vector<1x4x128xf32>
      %87 = vector.shape_cast %86 : vector<1x4x128xf32> to vector<4x128xf32>
      %cst_71 = arith.constant dense<0.000000e+00> : vector<8x128xf32>
      %88 = tpu.matmul %8, %87, %cst_71 {dimension_numbers = #tpu.dot_dimension_numbers<[1], [0], [0], [1], [0, 0, 1, 1], [], []>} : vector<8x4xf32>, vector<4x128xf32>, vector<8x128xf32> -> vector<8x128xf32>
      %89 = arith.addf %85, %88 : vector<8x128xf32>
      %c2_72 = arith.constant 2 : index
      %c6_73 = arith.constant 6 : index
      %c0_74 = arith.constant 0 : index
      %90 = vector.load %arg2[%c2_72, %c6_73, %c0_74] : memref<4x16x128xf32, #tpu.memory_space<vmem>>, vector<1x4x128xf32>
      %91 = vector.shape_cast %90 : vector<1x4x128xf32> to vector<4x128xf32>
      %cst_75 = arith.constant dense<0.000000e+00> : vector<8x128xf32>
      %92 = tpu.matmul %10, %91, %cst_75 {dimension_numbers = #tpu.dot_dimension_numbers<[1], [0], [0], [1], [0, 0, 1, 1], [], []>} : vector<8x4xf32>, vector<4x128xf32>, vector<8x128xf32> -> vector<8x128xf32>
      %93 = arith.addf %89, %92 : vector<8x128xf32>
      %c3_76 = arith.constant 3 : index
      %c6_77 = arith.constant 6 : index
      %c0_78 = arith.constant 0 : index
      %94 = vector.load %arg2[%c3_76, %c6_77, %c0_78] : memref<4x16x128xf32, #tpu.memory_space<vmem>>, vector<1x4x128xf32>
      %95 = vector.shape_cast %94 : vector<1x4x128xf32> to vector<4x128xf32>
      %cst_79 = arith.constant dense<0.000000e+00> : vector<8x128xf32>
      %96 = tpu.matmul %12, %95, %cst_79 {dimension_numbers = #tpu.dot_dimension_numbers<[1], [0], [0], [1], [0, 0, 1, 1], [], []>} : vector<8x4xf32>, vector<4x128xf32>, vector<8x128xf32> -> vector<8x128xf32>
      %97 = arith.addf %93, %96 : vector<8x128xf32>
      %98 = arith.addf %78, %97 : vector<8x128xf32>
      %99 = arith.mulf %97, %97 : vector<8x128xf32>
      %100 = arith.addf %80, %99 : vector<8x128xf32>
      %cst_80 = arith.constant 0.000000e+00 : f32
      %101 = vector.broadcast %cst_80 : f32 to vector<8x128xf32>
      %c0_81 = arith.constant 0 : index
      %c8 = arith.constant 8 : index
      %c0_82 = arith.constant 0 : index
      %102 = vector.load %arg2[%c0_81, %c8, %c0_82] : memref<4x16x128xf32, #tpu.memory_space<vmem>>, vector<1x4x128xf32>
      %103 = vector.shape_cast %102 : vector<1x4x128xf32> to vector<4x128xf32>
      %cst_83 = arith.constant dense<0.000000e+00> : vector<8x128xf32>
      %104 = tpu.matmul %6, %103, %cst_83 {dimension_numbers = #tpu.dot_dimension_numbers<[1], [0], [0], [1], [0, 0, 1, 1], [], []>} : vector<8x4xf32>, vector<4x128xf32>, vector<8x128xf32> -> vector<8x128xf32>
      %105 = arith.addf %101, %104 : vector<8x128xf32>
      %c1_84 = arith.constant 1 : index
      %c8_85 = arith.constant 8 : index
      %c0_86 = arith.constant 0 : index
      %106 = vector.load %arg2[%c1_84, %c8_85, %c0_86] : memref<4x16x128xf32, #tpu.memory_space<vmem>>, vector<1x4x128xf32>
      %107 = vector.shape_cast %106 : vector<1x4x128xf32> to vector<4x128xf32>
      %cst_87 = arith.constant dense<0.000000e+00> : vector<8x128xf32>
      %108 = tpu.matmul %8, %107, %cst_87 {dimension_numbers = #tpu.dot_dimension_numbers<[1], [0], [0], [1], [0, 0, 1, 1], [], []>} : vector<8x4xf32>, vector<4x128xf32>, vector<8x128xf32> -> vector<8x128xf32>
      %109 = arith.addf %105, %108 : vector<8x128xf32>
      %c2_88 = arith.constant 2 : index
      %c8_89 = arith.constant 8 : index
      %c0_90 = arith.constant 0 : index
      %110 = vector.load %arg2[%c2_88, %c8_89, %c0_90] : memref<4x16x128xf32, #tpu.memory_space<vmem>>, vector<1x4x128xf32>
      %111 = vector.shape_cast %110 : vector<1x4x128xf32> to vector<4x128xf32>
      %cst_91 = arith.constant dense<0.000000e+00> : vector<8x128xf32>
      %112 = tpu.matmul %10, %111, %cst_91 {dimension_numbers = #tpu.dot_dimension_numbers<[1], [0], [0], [1], [0, 0, 1, 1], [], []>} : vector<8x4xf32>, vector<4x128xf32>, vector<8x128xf32> -> vector<8x128xf32>
      %113 = arith.addf %109, %112 : vector<8x128xf32>
      %c3_92 = arith.constant 3 : index
      %c8_93 = arith.constant 8 : index
      %c0_94 = arith.constant 0 : index
      %114 = vector.load %arg2[%c3_92, %c8_93, %c0_94] : memref<4x16x128xf32, #tpu.memory_space<vmem>>, vector<1x4x128xf32>
      %115 = vector.shape_cast %114 : vector<1x4x128xf32> to vector<4x128xf32>
      %cst_95 = arith.constant dense<0.000000e+00> : vector<8x128xf32>
      %116 = tpu.matmul %12, %115, %cst_95 {dimension_numbers = #tpu.dot_dimension_numbers<[1], [0], [0], [1], [0, 0, 1, 1], [], []>} : vector<8x4xf32>, vector<4x128xf32>, vector<8x128xf32> -> vector<8x128xf32>
      %117 = arith.addf %113, %116 : vector<8x128xf32>
      %118 = arith.addf %98, %117 : vector<8x128xf32>
      %119 = arith.mulf %117, %117 : vector<8x128xf32>
      %120 = arith.addf %100, %119 : vector<8x128xf32>
      %cst_96 = arith.constant 0.000000e+00 : f32
      %121 = vector.broadcast %cst_96 : f32 to vector<8x128xf32>
      %c0_97 = arith.constant 0 : index
      %c10 = arith.constant 10 : index
      %c0_98 = arith.constant 0 : index
      %122 = vector.load %arg2[%c0_97, %c10, %c0_98] : memref<4x16x128xf32, #tpu.memory_space<vmem>>, vector<1x4x128xf32>
      %123 = vector.shape_cast %122 : vector<1x4x128xf32> to vector<4x128xf32>
      %cst_99 = arith.constant dense<0.000000e+00> : vector<8x128xf32>
      %124 = tpu.matmul %6, %123, %cst_99 {dimension_numbers = #tpu.dot_dimension_numbers<[1], [0], [0], [1], [0, 0, 1, 1], [], []>} : vector<8x4xf32>, vector<4x128xf32>, vector<8x128xf32> -> vector<8x128xf32>
      %125 = arith.addf %121, %124 : vector<8x128xf32>
      %c1_100 = arith.constant 1 : index
      %c10_101 = arith.constant 10 : index
      %c0_102 = arith.constant 0 : index
      %126 = vector.load %arg2[%c1_100, %c10_101, %c0_102] : memref<4x16x128xf32, #tpu.memory_space<vmem>>, vector<1x4x128xf32>
      %127 = vector.shape_cast %126 : vector<1x4x128xf32> to vector<4x128xf32>
      %cst_103 = arith.constant dense<0.000000e+00> : vector<8x128xf32>
      %128 = tpu.matmul %8, %127, %cst_103 {dimension_numbers = #tpu.dot_dimension_numbers<[1], [0], [0], [1], [0, 0, 1, 1], [], []>} : vector<8x4xf32>, vector<4x128xf32>, vector<8x128xf32> -> vector<8x128xf32>
      %129 = arith.addf %125, %128 : vector<8x128xf32>
      %c2_104 = arith.constant 2 : index
      %c10_105 = arith.constant 10 : index
      %c0_106 = arith.constant 0 : index
      %130 = vector.load %arg2[%c2_104, %c10_105, %c0_106] : memref<4x16x128xf32, #tpu.memory_space<vmem>>, vector<1x4x128xf32>
      %131 = vector.shape_cast %130 : vector<1x4x128xf32> to vector<4x128xf32>
      %cst_107 = arith.constant dense<0.000000e+00> : vector<8x128xf32>
      %132 = tpu.matmul %10, %131, %cst_107 {dimension_numbers = #tpu.dot_dimension_numbers<[1], [0], [0], [1], [0, 0, 1, 1], [], []>} : vector<8x4xf32>, vector<4x128xf32>, vector<8x128xf32> -> vector<8x128xf32>
      %133 = arith.addf %129, %132 : vector<8x128xf32>
      %c3_108 = arith.constant 3 : index
      %c10_109 = arith.constant 10 : index
      %c0_110 = arith.constant 0 : index
      %134 = vector.load %arg2[%c3_108, %c10_109, %c0_110] : memref<4x16x128xf32, #tpu.memory_space<vmem>>, vector<1x4x128xf32>
      %135 = vector.shape_cast %134 : vector<1x4x128xf32> to vector<4x128xf32>
      %cst_111 = arith.constant dense<0.000000e+00> : vector<8x128xf32>
      %136 = tpu.matmul %12, %135, %cst_111 {dimension_numbers = #tpu.dot_dimension_numbers<[1], [0], [0], [1], [0, 0, 1, 1], [], []>} : vector<8x4xf32>, vector<4x128xf32>, vector<8x128xf32> -> vector<8x128xf32>
      %137 = arith.addf %133, %136 : vector<8x128xf32>
      %138 = arith.addf %118, %137 : vector<8x128xf32>
      %139 = arith.mulf %137, %137 : vector<8x128xf32>
      %140 = arith.addf %120, %139 : vector<8x128xf32>
      %cst_112 = arith.constant 0.000000e+00 : f32
      %141 = vector.broadcast %cst_112 : f32 to vector<8x128xf32>
      %c0_113 = arith.constant 0 : index
      %c12 = arith.constant 12 : index
      %c0_114 = arith.constant 0 : index
      %142 = vector.load %arg2[%c0_113, %c12, %c0_114] : memref<4x16x128xf32, #tpu.memory_space<vmem>>, vector<1x4x128xf32>
      %143 = vector.shape_cast %142 : vector<1x4x128xf32> to vector<4x128xf32>
      %cst_115 = arith.constant dense<0.000000e+00> : vector<8x128xf32>
      %144 = tpu.matmul %6, %143, %cst_115 {dimension_numbers = #tpu.dot_dimension_numbers<[1], [0], [0], [1], [0, 0, 1, 1], [], []>} : vector<8x4xf32>, vector<4x128xf32>, vector<8x128xf32> -> vector<8x128xf32>
      %145 = arith.addf %141, %144 : vector<8x128xf32>
      %c1_116 = arith.constant 1 : index
      %c12_117 = arith.constant 12 : index
      %c0_118 = arith.constant 0 : index
      %146 = vector.load %arg2[%c1_116, %c12_117, %c0_118] : memref<4x16x128xf32, #tpu.memory_space<vmem>>, vector<1x4x128xf32>
      %147 = vector.shape_cast %146 : vector<1x4x128xf32> to vector<4x128xf32>
      %cst_119 = arith.constant dense<0.000000e+00> : vector<8x128xf32>
      %148 = tpu.matmul %8, %147, %cst_119 {dimension_numbers = #tpu.dot_dimension_numbers<[1], [0], [0], [1], [0, 0, 1, 1], [], []>} : vector<8x4xf32>, vector<4x128xf32>, vector<8x128xf32> -> vector<8x128xf32>
      %149 = arith.addf %145, %148 : vector<8x128xf32>
      %c2_120 = arith.constant 2 : index
      %c12_121 = arith.constant 12 : index
      %c0_122 = arith.constant 0 : index
      %150 = vector.load %arg2[%c2_120, %c12_121, %c0_122] : memref<4x16x128xf32, #tpu.memory_space<vmem>>, vector<1x4x128xf32>
      %151 = vector.shape_cast %150 : vector<1x4x128xf32> to vector<4x128xf32>
      %cst_123 = arith.constant dense<0.000000e+00> : vector<8x128xf32>
      %152 = tpu.matmul %10, %151, %cst_123 {dimension_numbers = #tpu.dot_dimension_numbers<[1], [0], [0], [1], [0, 0, 1, 1], [], []>} : vector<8x4xf32>, vector<4x128xf32>, vector<8x128xf32> -> vector<8x128xf32>
      %153 = arith.addf %149, %152 : vector<8x128xf32>
      %c3_124 = arith.constant 3 : index
      %c12_125 = arith.constant 12 : index
      %c0_126 = arith.constant 0 : index
      %154 = vector.load %arg2[%c3_124, %c12_125, %c0_126] : memref<4x16x128xf32, #tpu.memory_space<vmem>>, vector<1x4x128xf32>
      %155 = vector.shape_cast %154 : vector<1x4x128xf32> to vector<4x128xf32>
      %cst_127 = arith.constant dense<0.000000e+00> : vector<8x128xf32>
      %156 = tpu.matmul %12, %155, %cst_127 {dimension_numbers = #tpu.dot_dimension_numbers<[1], [0], [0], [1], [0, 0, 1, 1], [], []>} : vector<8x4xf32>, vector<4x128xf32>, vector<8x128xf32> -> vector<8x128xf32>
      %157 = arith.addf %153, %156 : vector<8x128xf32>
      %158 = arith.addf %138, %157 : vector<8x128xf32>
      %159 = arith.mulf %157, %157 : vector<8x128xf32>
      %160 = arith.addf %140, %159 : vector<8x128xf32>
      %c0_128 = arith.constant 0 : index
      %c0_129 = arith.constant 0 : index
      %161 = vector.load %arg7[%c0_128, %c0_129] : memref<8x1xf32, #tpu.memory_space<vmem>>, vector<8x1xf32>
      %cst_130 = arith.constant dense<0.000000e+00> : vector<8xf32>
      %162 = vector.multi_reduction <add>, %158, %cst_130 [1] : vector<8x128xf32> to vector<8xf32>
      %163 = vector.shape_cast %162 : vector<8xf32> to vector<8x1xf32>
      %164 = arith.addf %161, %163 : vector<8x1xf32>
      %c0_131 = arith.constant 0 : index
      %c0_132 = arith.constant 0 : index
      %165 = vector.load %arg7[%c0_131, %c0_132] : memref<8x1xf32, #tpu.memory_space<vmem>>, vector<8x1xf32>
      tpu.vector_store %arg7[%c0_131, %c0_132], %164 {strides = array<i32>} : memref<8x1xf32, #tpu.memory_space<vmem>>, vector<8x1xf32>,
      %c0_133 = arith.constant 0 : index
      %c0_134 = arith.constant 0 : index
      %166 = vector.load %arg8[%c0_133, %c0_134] : memref<8x1xf32, #tpu.memory_space<vmem>>, vector<8x1xf32>
      %cst_135 = arith.constant dense<0.000000e+00> : vector<8xf32>
      %167 = vector.multi_reduction <add>, %160, %cst_135 [1] : vector<8x128xf32> to vector<8xf32>
      %168 = vector.shape_cast %167 : vector<8xf32> to vector<8x1xf32>
      %169 = arith.addf %166, %168 : vector<8x1xf32>
      %c0_136 = arith.constant 0 : index
      %c0_137 = arith.constant 0 : index
      %170 = vector.load %arg8[%c0_136, %c0_137] : memref<8x1xf32, #tpu.memory_space<vmem>>, vector<8x1xf32>
      tpu.vector_store %arg8[%c0_136, %c0_137], %169 {strides = array<i32>} : memref<8x1xf32, #tpu.memory_space<vmem>>, vector<8x1xf32>,
    } else {
    }
    %c1_i32 = arith.constant 1 : i32
    %16 = arith.cmpi eq, %arg0, %c1_i32 : i32
    %17 = arith.extui %16 : i1 to i32
    %c0_i32_12 = arith.constant 0 : i32
    %18 = arith.cmpi ne, %17, %c0_i32_12 : i32
    scf.if %18 {
      %c0_13 = arith.constant 0 : index
      %c0_14 = arith.constant 0 : index
      %19 = vector.load %arg7[%c0_13, %c0_14] : memref<8x1xf32, #tpu.memory_space<vmem>>, vector<8x1xf32>
      %cst = arith.constant 0.00446428591 : f32
      %20 = vector.broadcast %cst : f32 to vector<8x1xf32>
      %21 = arith.mulf %19, %20 : vector<8x1xf32>
      %c0_15 = arith.constant 0 : index
      %c0_16 = arith.constant 0 : index
      %22 = vector.load %arg8[%c0_15, %c0_16] : memref<8x1xf32, #tpu.memory_space<vmem>>, vector<8x1xf32>
      %cst_17 = arith.constant 0.00446428591 : f32
      %23 = vector.broadcast %cst_17 : f32 to vector<8x1xf32>
      %24 = arith.mulf %22, %23 : vector<8x1xf32>
      %25 = arith.mulf %21, %21 : vector<8x1xf32>
      %26 = arith.subf %24, %25 : vector<8x1xf32>
      %c0_18 = arith.constant 0 : index
      %c0_19 = arith.constant 0 : index
      %27 = vector.load %arg4[%c0_18, %c0_19] : memref<8x1xf32, #tpu.memory_space<vmem>>, vector<8x1xf32>
      %cst_20 = arith.constant 9.99999974E-6 : f32
      %28 = vector.broadcast %cst_20 : f32 to vector<8x1xf32>
      %29 = arith.addf %26, %28 : vector<8x1xf32>
      %30 = math.rsqrt %29 : vector<8x1xf32>
      %31 = arith.mulf %27, %30 : vector<8x1xf32>
      %c0_21 = arith.constant 0 : index
      %c0_22 = arith.constant 0 : index
      %32 = vector.load %arg5[%c0_21, %c0_22] : memref<8x1xf32, #tpu.memory_space<vmem>>, vector<8x1xf32>
      %33 = arith.mulf %21, %31 : vector<8x1xf32>
      %34 = arith.subf %32, %33 : vector<8x1xf32>
      %35 = vector.shape_cast %34 : vector<8x1xf32> to vector<8x1xf32>
      %36 = vector.broadcast %35 : vector<8x1xf32> to vector<8x128xf32>
      %37 = vector.broadcast %31 : vector<8x1xf32> to vector<8x4xf32>
      %38 = arith.mulf %37, %6 : vector<8x4xf32>
      %39 = vector.broadcast %31 : vector<8x1xf32> to vector<8x4xf32>
      %40 = arith.mulf %39, %8 : vector<8x4xf32>
      %41 = vector.broadcast %31 : vector<8x1xf32> to vector<8x4xf32>
      %42 = arith.mulf %41, %10 : vector<8x4xf32>
      %43 = vector.broadcast %31 : vector<8x1xf32> to vector<8x4xf32>
      %44 = arith.mulf %43, %12 : vector<8x4xf32>
      %cst_23 = arith.constant 0.000000e+00 : f32
      %45 = vector.broadcast %cst_23 : f32 to vector<8x128xf32>
      %c0_24 = arith.constant 0 : index
      %c0_25 = arith.constant 0 : index
      %c0_26 = arith.constant 0 : index
      %46 = vector.load %arg2[%c0_24, %c0_25, %c0_26] : memref<4x16x128xf32, #tpu.memory_space<vmem>>, vector<1x4x128xf32>
      %47 = vector.shape_cast %46 : vector<1x4x128xf32> to vector<4x128xf32>
      %cst_27 = arith.constant dense<0.000000e+00> : vector<8x128xf32>
      %48 = tpu.matmul %38, %47, %cst_27 {dimension_numbers = #tpu.dot_dimension_numbers<[1], [0], [0], [1], [0, 0, 1, 1], [], []>} : vector<8x4xf32>, vector<4x128xf32>, vector<8x128xf32> -> vector<8x128xf32>
      %49 = arith.addf %45, %48 : vector<8x128xf32>
      %c1_28 = arith.constant 1 : index
      %c0_29 = arith.constant 0 : index
      %c0_30 = arith.constant 0 : index
      %50 = vector.load %arg2[%c1_28, %c0_29, %c0_30] : memref<4x16x128xf32, #tpu.memory_space<vmem>>, vector<1x4x128xf32>
      %51 = vector.shape_cast %50 : vector<1x4x128xf32> to vector<4x128xf32>
      %cst_31 = arith.constant dense<0.000000e+00> : vector<8x128xf32>
      %52 = tpu.matmul %40, %51, %cst_31 {dimension_numbers = #tpu.dot_dimension_numbers<[1], [0], [0], [1], [0, 0, 1, 1], [], []>} : vector<8x4xf32>, vector<4x128xf32>, vector<8x128xf32> -> vector<8x128xf32>
      %53 = arith.addf %49, %52 : vector<8x128xf32>
      %c2_32 = arith.constant 2 : index
      %c0_33 = arith.constant 0 : index
      %c0_34 = arith.constant 0 : index
      %54 = vector.load %arg2[%c2_32, %c0_33, %c0_34] : memref<4x16x128xf32, #tpu.memory_space<vmem>>, vector<1x4x128xf32>
      %55 = vector.shape_cast %54 : vector<1x4x128xf32> to vector<4x128xf32>
      %cst_35 = arith.constant dense<0.000000e+00> : vector<8x128xf32>
      %56 = tpu.matmul %42, %55, %cst_35 {dimension_numbers = #tpu.dot_dimension_numbers<[1], [0], [0], [1], [0, 0, 1, 1], [], []>} : vector<8x4xf32>, vector<4x128xf32>, vector<8x128xf32> -> vector<8x128xf32>
      %57 = arith.addf %53, %56 : vector<8x128xf32>
      %c3_36 = arith.constant 3 : index
      %c0_37 = arith.constant 0 : index
      %c0_38 = arith.constant 0 : index
      %58 = vector.load %arg2[%c3_36, %c0_37, %c0_38] : memref<4x16x128xf32, #tpu.memory_space<vmem>>, vector<1x4x128xf32>
      %59 = vector.shape_cast %58 : vector<1x4x128xf32> to vector<4x128xf32>
      %cst_39 = arith.constant dense<0.000000e+00> : vector<8x128xf32>
      %60 = tpu.matmul %44, %59, %cst_39 {dimension_numbers = #tpu.dot_dimension_numbers<[1], [0], [0], [1], [0, 0, 1, 1], [], []>} : vector<8x4xf32>, vector<4x128xf32>, vector<8x128xf32> -> vector<8x128xf32>
      %61 = arith.addf %57, %60 : vector<8x128xf32>
      %62 = arith.addf %61, %36 : vector<8x128xf32>
      %cst_40 = arith.constant 0.000000e+00 : f32
      %63 = vector.broadcast %cst_40 : f32 to vector<8x128xf32>
      %64 = arith.maximumf %62, %63 : vector<8x128xf32>
      %c0_41 = arith.constant 0 : index
      %c0_42 = arith.constant 0 : index
      %c0_43 = arith.constant 0 : index
      %65 = vector.load %arg6[%c0_41, %c0_42, %c0_43] : memref<7x8x128xf32, #tpu.memory_space<vmem>>, vector<1x8x128xf32>
      %66 = vector.shape_cast %65 : vector<1x8x128xf32> to vector<8x128xf32>
      %67 = vector.shape_cast %64 : vector<8x128xf32> to vector<1x8x128xf32>
      tpu.vector_store %arg6[%c0_41, %c0_42, %c0_43], %67 {strides = array<i32>} : memref<7x8x128xf32, #tpu.memory_space<vmem>>, vector<1x8x128xf32>,
      %cst_44 = arith.constant 0.000000e+00 : f32
      %68 = vector.broadcast %cst_44 : f32 to vector<8x128xf32>
      %c0_45 = arith.constant 0 : index
      %c2_46 = arith.constant 2 : index
      %c0_47 = arith.constant 0 : index
      %69 = vector.load %arg2[%c0_45, %c2_46, %c0_47] : memref<4x16x128xf32, #tpu.memory_space<vmem>>, vector<1x4x128xf32>
      %70 = vector.shape_cast %69 : vector<1x4x128xf32> to vector<4x128xf32>
      %cst_48 = arith.constant dense<0.000000e+00> : vector<8x128xf32>
      %71 = tpu.matmul %38, %70, %cst_48 {dimension_numbers = #tpu.dot_dimension_numbers<[1], [0], [0], [1], [0, 0, 1, 1], [], []>} : vector<8x4xf32>, vector<4x128xf32>, vector<8x128xf32> -> vector<8x128xf32>
      %72 = arith.addf %68, %71 : vector<8x128xf32>
      %c1_49 = arith.constant 1 : index
      %c2_50 = arith.constant 2 : index
      %c0_51 = arith.constant 0 : index
      %73 = vector.load %arg2[%c1_49, %c2_50, %c0_51] : memref<4x16x128xf32, #tpu.memory_space<vmem>>, vector<1x4x128xf32>
      %74 = vector.shape_cast %73 : vector<1x4x128xf32> to vector<4x128xf32>
      %cst_52 = arith.constant dense<0.000000e+00> : vector<8x128xf32>
      %75 = tpu.matmul %40, %74, %cst_52 {dimension_numbers = #tpu.dot_dimension_numbers<[1], [0], [0], [1], [0, 0, 1, 1], [], []>} : vector<8x4xf32>, vector<4x128xf32>, vector<8x128xf32> -> vector<8x128xf32>
      %76 = arith.addf %72, %75 : vector<8x128xf32>
      %c2_53 = arith.constant 2 : index
      %c2_54 = arith.constant 2 : index
      %c0_55 = arith.constant 0 : index
      %77 = vector.load %arg2[%c2_53, %c2_54, %c0_55] : memref<4x16x128xf32, #tpu.memory_space<vmem>>, vector<1x4x128xf32>
      %78 = vector.shape_cast %77 : vector<1x4x128xf32> to vector<4x128xf32>
      %cst_56 = arith.constant dense<0.000000e+00> : vector<8x128xf32>
      %79 = tpu.matmul %42, %78, %cst_56 {dimension_numbers = #tpu.dot_dimension_numbers<[1], [0], [0], [1], [0, 0, 1, 1], [], []>} : vector<8x4xf32>, vector<4x128xf32>, vector<8x128xf32> -> vector<8x128xf32>
      %80 = arith.addf %76, %79 : vector<8x128xf32>
      %c3_57 = arith.constant 3 : index
      %c2_58 = arith.constant 2 : index
      %c0_59 = arith.constant 0 : index
      %81 = vector.load %arg2[%c3_57, %c2_58, %c0_59] : memref<4x16x128xf32, #tpu.memory_space<vmem>>, vector<1x4x128xf32>
      %82 = vector.shape_cast %81 : vector<1x4x128xf32> to vector<4x128xf32>
      %cst_60 = arith.constant dense<0.000000e+00> : vector<8x128xf32>
      %83 = tpu.matmul %44, %82, %cst_60 {dimension_numbers = #tpu.dot_dimension_numbers<[1], [0], [0], [1], [0, 0, 1, 1], [], []>} : vector<8x4xf32>, vector<4x128xf32>, vector<8x128xf32> -> vector<8x128xf32>
      %84 = arith.addf %80, %83 : vector<8x128xf32>
      %85 = arith.addf %84, %36 : vector<8x128xf32>
      %cst_61 = arith.constant 0.000000e+00 : f32
      %86 = vector.broadcast %cst_61 : f32 to vector<8x128xf32>
      %87 = arith.maximumf %85, %86 : vector<8x128xf32>
      %c1_62 = arith.constant 1 : index
      %c0_63 = arith.constant 0 : index
      %c0_64 = arith.constant 0 : index
      %88 = vector.load %arg6[%c1_62, %c0_63, %c0_64] : memref<7x8x128xf32, #tpu.memory_space<vmem>>, vector<1x8x128xf32>
      %89 = vector.shape_cast %88 : vector<1x8x128xf32> to vector<8x128xf32>
      %90 = vector.shape_cast %87 : vector<8x128xf32> to vector<1x8x128xf32>
      tpu.vector_store %arg6[%c1_62, %c0_63, %c0_64], %90 {strides = array<i32>} : memref<7x8x128xf32, #tpu.memory_space<vmem>>, vector<1x8x128xf32>,
      %cst_65 = arith.constant 0.000000e+00 : f32
      %91 = vector.broadcast %cst_65 : f32 to vector<8x128xf32>
      %c0_66 = arith.constant 0 : index
      %c4 = arith.constant 4 : index
      %c0_67 = arith.constant 0 : index
      %92 = vector.load %arg2[%c0_66, %c4, %c0_67] : memref<4x16x128xf32, #tpu.memory_space<vmem>>, vector<1x4x128xf32>
      %93 = vector.shape_cast %92 : vector<1x4x128xf32> to vector<4x128xf32>
      %cst_68 = arith.constant dense<0.000000e+00> : vector<8x128xf32>
      %94 = tpu.matmul %38, %93, %cst_68 {dimension_numbers = #tpu.dot_dimension_numbers<[1], [0], [0], [1], [0, 0, 1, 1], [], []>} : vector<8x4xf32>, vector<4x128xf32>, vector<8x128xf32> -> vector<8x128xf32>
      %95 = arith.addf %91, %94 : vector<8x128xf32>
      %c1_69 = arith.constant 1 : index
      %c4_70 = arith.constant 4 : index
      %c0_71 = arith.constant 0 : index
      %96 = vector.load %arg2[%c1_69, %c4_70, %c0_71] : memref<4x16x128xf32, #tpu.memory_space<vmem>>, vector<1x4x128xf32>
      %97 = vector.shape_cast %96 : vector<1x4x128xf32> to vector<4x128xf32>
      %cst_72 = arith.constant dense<0.000000e+00> : vector<8x128xf32>
      %98 = tpu.matmul %40, %97, %cst_72 {dimension_numbers = #tpu.dot_dimension_numbers<[1], [0], [0], [1], [0, 0, 1, 1], [], []>} : vector<8x4xf32>, vector<4x128xf32>, vector<8x128xf32> -> vector<8x128xf32>
      %99 = arith.addf %95, %98 : vector<8x128xf32>
      %c2_73 = arith.constant 2 : index
      %c4_74 = arith.constant 4 : index
      %c0_75 = arith.constant 0 : index
      %100 = vector.load %arg2[%c2_73, %c4_74, %c0_75] : memref<4x16x128xf32, #tpu.memory_space<vmem>>, vector<1x4x128xf32>
      %101 = vector.shape_cast %100 : vector<1x4x128xf32> to vector<4x128xf32>
      %cst_76 = arith.constant dense<0.000000e+00> : vector<8x128xf32>
      %102 = tpu.matmul %42, %101, %cst_76 {dimension_numbers = #tpu.dot_dimension_numbers<[1], [0], [0], [1], [0, 0, 1, 1], [], []>} : vector<8x4xf32>, vector<4x128xf32>, vector<8x128xf32> -> vector<8x128xf32>
      %103 = arith.addf %99, %102 : vector<8x128xf32>
      %c3_77 = arith.constant 3 : index
      %c4_78 = arith.constant 4 : index
      %c0_79 = arith.constant 0 : index
      %104 = vector.load %arg2[%c3_77, %c4_78, %c0_79] : memref<4x16x128xf32, #tpu.memory_space<vmem>>, vector<1x4x128xf32>
      %105 = vector.shape_cast %104 : vector<1x4x128xf32> to vector<4x128xf32>
      %cst_80 = arith.constant dense<0.000000e+00> : vector<8x128xf32>
      %106 = tpu.matmul %44, %105, %cst_80 {dimension_numbers = #tpu.dot_dimension_numbers<[1], [0], [0], [1], [0, 0, 1, 1], [], []>} : vector<8x4xf32>, vector<4x128xf32>, vector<8x128xf32> -> vector<8x128xf32>
      %107 = arith.addf %103, %106 : vector<8x128xf32>
      %108 = arith.addf %107, %36 : vector<8x128xf32>
      %cst_81 = arith.constant 0.000000e+00 : f32
      %109 = vector.broadcast %cst_81 : f32 to vector<8x128xf32>
      %110 = arith.maximumf %108, %109 : vector<8x128xf32>
      %c2_82 = arith.constant 2 : index
      %c0_83 = arith.constant 0 : index
      %c0_84 = arith.constant 0 : index
      %111 = vector.load %arg6[%c2_82, %c0_83, %c0_84] : memref<7x8x128xf32, #tpu.memory_space<vmem>>, vector<1x8x128xf32>
      %112 = vector.shape_cast %111 : vector<1x8x128xf32> to vector<8x128xf32>
      %113 = vector.shape_cast %110 : vector<8x128xf32> to vector<1x8x128xf32>
      tpu.vector_store %arg6[%c2_82, %c0_83, %c0_84], %113 {strides = array<i32>} : memref<7x8x128xf32, #tpu.memory_space<vmem>>, vector<1x8x128xf32>,
      %cst_85 = arith.constant 0.000000e+00 : f32
      %114 = vector.broadcast %cst_85 : f32 to vector<8x128xf32>
      %c0_86 = arith.constant 0 : index
      %c6 = arith.constant 6 : index
      %c0_87 = arith.constant 0 : index
      %115 = vector.load %arg2[%c0_86, %c6, %c0_87] : memref<4x16x128xf32, #tpu.memory_space<vmem>>, vector<1x4x128xf32>
      %116 = vector.shape_cast %115 : vector<1x4x128xf32> to vector<4x128xf32>
      %cst_88 = arith.constant dense<0.000000e+00> : vector<8x128xf32>
      %117 = tpu.matmul %38, %116, %cst_88 {dimension_numbers = #tpu.dot_dimension_numbers<[1], [0], [0], [1], [0, 0, 1, 1], [], []>} : vector<8x4xf32>, vector<4x128xf32>, vector<8x128xf32> -> vector<8x128xf32>
      %118 = arith.addf %114, %117 : vector<8x128xf32>
      %c1_89 = arith.constant 1 : index
      %c6_90 = arith.constant 6 : index
      %c0_91 = arith.constant 0 : index
      %119 = vector.load %arg2[%c1_89, %c6_90, %c0_91] : memref<4x16x128xf32, #tpu.memory_space<vmem>>, vector<1x4x128xf32>
      %120 = vector.shape_cast %119 : vector<1x4x128xf32> to vector<4x128xf32>
      %cst_92 = arith.constant dense<0.000000e+00> : vector<8x128xf32>
      %121 = tpu.matmul %40, %120, %cst_92 {dimension_numbers = #tpu.dot_dimension_numbers<[1], [0], [0], [1], [0, 0, 1, 1], [], []>} : vector<8x4xf32>, vector<4x128xf32>, vector<8x128xf32> -> vector<8x128xf32>
      %122 = arith.addf %118, %121 : vector<8x128xf32>
      %c2_93 = arith.constant 2 : index
      %c6_94 = arith.constant 6 : index
      %c0_95 = arith.constant 0 : index
      %123 = vector.load %arg2[%c2_93, %c6_94, %c0_95] : memref<4x16x128xf32, #tpu.memory_space<vmem>>, vector<1x4x128xf32>
      %124 = vector.shape_cast %123 : vector<1x4x128xf32> to vector<4x128xf32>
      %cst_96 = arith.constant dense<0.000000e+00> : vector<8x128xf32>
      %125 = tpu.matmul %42, %124, %cst_96 {dimension_numbers = #tpu.dot_dimension_numbers<[1], [0], [0], [1], [0, 0, 1, 1], [], []>} : vector<8x4xf32>, vector<4x128xf32>, vector<8x128xf32> -> vector<8x128xf32>
      %126 = arith.addf %122, %125 : vector<8x128xf32>
      %c3_97 = arith.constant 3 : index
      %c6_98 = arith.constant 6 : index
      %c0_99 = arith.constant 0 : index
      %127 = vector.load %arg2[%c3_97, %c6_98, %c0_99] : memref<4x16x128xf32, #tpu.memory_space<vmem>>, vector<1x4x128xf32>
      %128 = vector.shape_cast %127 : vector<1x4x128xf32> to vector<4x128xf32>
      %cst_100 = arith.constant dense<0.000000e+00> : vector<8x128xf32>
      %129 = tpu.matmul %44, %128, %cst_100 {dimension_numbers = #tpu.dot_dimension_numbers<[1], [0], [0], [1], [0, 0, 1, 1], [], []>} : vector<8x4xf32>, vector<4x128xf32>, vector<8x128xf32> -> vector<8x128xf32>
      %130 = arith.addf %126, %129 : vector<8x128xf32>
      %131 = arith.addf %130, %36 : vector<8x128xf32>
      %cst_101 = arith.constant 0.000000e+00 : f32
      %132 = vector.broadcast %cst_101 : f32 to vector<8x128xf32>
      %133 = arith.maximumf %131, %132 : vector<8x128xf32>
      %c3_102 = arith.constant 3 : index
      %c0_103 = arith.constant 0 : index
      %c0_104 = arith.constant 0 : index
      %134 = vector.load %arg6[%c3_102, %c0_103, %c0_104] : memref<7x8x128xf32, #tpu.memory_space<vmem>>, vector<1x8x128xf32>
      %135 = vector.shape_cast %134 : vector<1x8x128xf32> to vector<8x128xf32>
      %136 = vector.shape_cast %133 : vector<8x128xf32> to vector<1x8x128xf32>
      tpu.vector_store %arg6[%c3_102, %c0_103, %c0_104], %136 {strides = array<i32>} : memref<7x8x128xf32, #tpu.memory_space<vmem>>, vector<1x8x128xf32>,
      %cst_105 = arith.constant 0.000000e+00 : f32
      %137 = vector.broadcast %cst_105 : f32 to vector<8x128xf32>
      %c0_106 = arith.constant 0 : index
      %c8 = arith.constant 8 : index
      %c0_107 = arith.constant 0 : index
      %138 = vector.load %arg2[%c0_106, %c8, %c0_107] : memref<4x16x128xf32, #tpu.memory_space<vmem>>, vector<1x4x128xf32>
      %139 = vector.shape_cast %138 : vector<1x4x128xf32> to vector<4x128xf32>
      %cst_108 = arith.constant dense<0.000000e+00> : vector<8x128xf32>
      %140 = tpu.matmul %38, %139, %cst_108 {dimension_numbers = #tpu.dot_dimension_numbers<[1], [0], [0], [1], [0, 0, 1, 1], [], []>} : vector<8x4xf32>, vector<4x128xf32>, vector<8x128xf32> -> vector<8x128xf32>
      %141 = arith.addf %137, %140 : vector<8x128xf32>
      %c1_109 = arith.constant 1 : index
      %c8_110 = arith.constant 8 : index
      %c0_111 = arith.constant 0 : index
      %142 = vector.load %arg2[%c1_109, %c8_110, %c0_111] : memref<4x16x128xf32, #tpu.memory_space<vmem>>, vector<1x4x128xf32>
      %143 = vector.shape_cast %142 : vector<1x4x128xf32> to vector<4x128xf32>
      %cst_112 = arith.constant dense<0.000000e+00> : vector<8x128xf32>
      %144 = tpu.matmul %40, %143, %cst_112 {dimension_numbers = #tpu.dot_dimension_numbers<[1], [0], [0], [1], [0, 0, 1, 1], [], []>} : vector<8x4xf32>, vector<4x128xf32>, vector<8x128xf32> -> vector<8x128xf32>
      %145 = arith.addf %141, %144 : vector<8x128xf32>
      %c2_113 = arith.constant 2 : index
      %c8_114 = arith.constant 8 : index
      %c0_115 = arith.constant 0 : index
      %146 = vector.load %arg2[%c2_113, %c8_114, %c0_115] : memref<4x16x128xf32, #tpu.memory_space<vmem>>, vector<1x4x128xf32>
      %147 = vector.shape_cast %146 : vector<1x4x128xf32> to vector<4x128xf32>
      %cst_116 = arith.constant dense<0.000000e+00> : vector<8x128xf32>
      %148 = tpu.matmul %42, %147, %cst_116 {dimension_numbers = #tpu.dot_dimension_numbers<[1], [0], [0], [1], [0, 0, 1, 1], [], []>} : vector<8x4xf32>, vector<4x128xf32>, vector<8x128xf32> -> vector<8x128xf32>
      %149 = arith.addf %145, %148 : vector<8x128xf32>
      %c3_117 = arith.constant 3 : index
      %c8_118 = arith.constant 8 : index
      %c0_119 = arith.constant 0 : index
      %150 = vector.load %arg2[%c3_117, %c8_118, %c0_119] : memref<4x16x128xf32, #tpu.memory_space<vmem>>, vector<1x4x128xf32>
      %151 = vector.shape_cast %150 : vector<1x4x128xf32> to vector<4x128xf32>
      %cst_120 = arith.constant dense<0.000000e+00> : vector<8x128xf32>
      %152 = tpu.matmul %44, %151, %cst_120 {dimension_numbers = #tpu.dot_dimension_numbers<[1], [0], [0], [1], [0, 0, 1, 1], [], []>} : vector<8x4xf32>, vector<4x128xf32>, vector<8x128xf32> -> vector<8x128xf32>
      %153 = arith.addf %149, %152 : vector<8x128xf32>
      %154 = arith.addf %153, %36 : vector<8x128xf32>
      %cst_121 = arith.constant 0.000000e+00 : f32
      %155 = vector.broadcast %cst_121 : f32 to vector<8x128xf32>
      %156 = arith.maximumf %154, %155 : vector<8x128xf32>
      %c4_122 = arith.constant 4 : index
      %c0_123 = arith.constant 0 : index
      %c0_124 = arith.constant 0 : index
      %157 = vector.load %arg6[%c4_122, %c0_123, %c0_124] : memref<7x8x128xf32, #tpu.memory_space<vmem>>, vector<1x8x128xf32>
      %158 = vector.shape_cast %157 : vector<1x8x128xf32> to vector<8x128xf32>
      %159 = vector.shape_cast %156 : vector<8x128xf32> to vector<1x8x128xf32>
      tpu.vector_store %arg6[%c4_122, %c0_123, %c0_124], %159 {strides = array<i32>} : memref<7x8x128xf32, #tpu.memory_space<vmem>>, vector<1x8x128xf32>,
      %cst_125 = arith.constant 0.000000e+00 : f32
      %160 = vector.broadcast %cst_125 : f32 to vector<8x128xf32>
      %c0_126 = arith.constant 0 : index
      %c10 = arith.constant 10 : index
      %c0_127 = arith.constant 0 : index
      %161 = vector.load %arg2[%c0_126, %c10, %c0_127] : memref<4x16x128xf32, #tpu.memory_space<vmem>>, vector<1x4x128xf32>
      %162 = vector.shape_cast %161 : vector<1x4x128xf32> to vector<4x128xf32>
      %cst_128 = arith.constant dense<0.000000e+00> : vector<8x128xf32>
      %163 = tpu.matmul %38, %162, %cst_128 {dimension_numbers = #tpu.dot_dimension_numbers<[1], [0], [0], [1], [0, 0, 1, 1], [], []>} : vector<8x4xf32>, vector<4x128xf32>, vector<8x128xf32> -> vector<8x128xf32>
      %164 = arith.addf %160, %163 : vector<8x128xf32>
      %c1_129 = arith.constant 1 : index
      %c10_130 = arith.constant 10 : index
      %c0_131 = arith.constant 0 : index
      %165 = vector.load %arg2[%c1_129, %c10_130, %c0_131] : memref<4x16x128xf32, #tpu.memory_space<vmem>>, vector<1x4x128xf32>
      %166 = vector.shape_cast %165 : vector<1x4x128xf32> to vector<4x128xf32>
      %cst_132 = arith.constant dense<0.000000e+00> : vector<8x128xf32>
      %167 = tpu.matmul %40, %166, %cst_132 {dimension_numbers = #tpu.dot_dimension_numbers<[1], [0], [0], [1], [0, 0, 1, 1], [], []>} : vector<8x4xf32>, vector<4x128xf32>, vector<8x128xf32> -> vector<8x128xf32>
      %168 = arith.addf %164, %167 : vector<8x128xf32>
      %c2_133 = arith.constant 2 : index
      %c10_134 = arith.constant 10 : index
      %c0_135 = arith.constant 0 : index
      %169 = vector.load %arg2[%c2_133, %c10_134, %c0_135] : memref<4x16x128xf32, #tpu.memory_space<vmem>>, vector<1x4x128xf32>
      %170 = vector.shape_cast %169 : vector<1x4x128xf32> to vector<4x128xf32>
      %cst_136 = arith.constant dense<0.000000e+00> : vector<8x128xf32>
      %171 = tpu.matmul %42, %170, %cst_136 {dimension_numbers = #tpu.dot_dimension_numbers<[1], [0], [0], [1], [0, 0, 1, 1], [], []>} : vector<8x4xf32>, vector<4x128xf32>, vector<8x128xf32> -> vector<8x128xf32>
      %172 = arith.addf %168, %171 : vector<8x128xf32>
      %c3_137 = arith.constant 3 : index
      %c10_138 = arith.constant 10 : index
      %c0_139 = arith.constant 0 : index
      %173 = vector.load %arg2[%c3_137, %c10_138, %c0_139] : memref<4x16x128xf32, #tpu.memory_space<vmem>>, vector<1x4x128xf32>
      %174 = vector.shape_cast %173 : vector<1x4x128xf32> to vector<4x128xf32>
      %cst_140 = arith.constant dense<0.000000e+00> : vector<8x128xf32>
      %175 = tpu.matmul %44, %174, %cst_140 {dimension_numbers = #tpu.dot_dimension_numbers<[1], [0], [0], [1], [0, 0, 1, 1], [], []>} : vector<8x4xf32>, vector<4x128xf32>, vector<8x128xf32> -> vector<8x128xf32>
      %176 = arith.addf %172, %175 : vector<8x128xf32>
      %177 = arith.addf %176, %36 : vector<8x128xf32>
      %cst_141 = arith.constant 0.000000e+00 : f32
      %178 = vector.broadcast %cst_141 : f32 to vector<8x128xf32>
      %179 = arith.maximumf %177, %178 : vector<8x128xf32>
      %c5 = arith.constant 5 : index
      %c0_142 = arith.constant 0 : index
      %c0_143 = arith.constant 0 : index
      %180 = vector.load %arg6[%c5, %c0_142, %c0_143] : memref<7x8x128xf32, #tpu.memory_space<vmem>>, vector<1x8x128xf32>
      %181 = vector.shape_cast %180 : vector<1x8x128xf32> to vector<8x128xf32>
      %182 = vector.shape_cast %179 : vector<8x128xf32> to vector<1x8x128xf32>
      tpu.vector_store %arg6[%c5, %c0_142, %c0_143], %182 {strides = array<i32>} : memref<7x8x128xf32, #tpu.memory_space<vmem>>, vector<1x8x128xf32>,
      %cst_144 = arith.constant 0.000000e+00 : f32
      %183 = vector.broadcast %cst_144 : f32 to vector<8x128xf32>
      %c0_145 = arith.constant 0 : index
      %c12 = arith.constant 12 : index
      %c0_146 = arith.constant 0 : index
      %184 = vector.load %arg2[%c0_145, %c12, %c0_146] : memref<4x16x128xf32, #tpu.memory_space<vmem>>, vector<1x4x128xf32>
      %185 = vector.shape_cast %184 : vector<1x4x128xf32> to vector<4x128xf32>
      %cst_147 = arith.constant dense<0.000000e+00> : vector<8x128xf32>
      %186 = tpu.matmul %38, %185, %cst_147 {dimension_numbers = #tpu.dot_dimension_numbers<[1], [0], [0], [1], [0, 0, 1, 1], [], []>} : vector<8x4xf32>, vector<4x128xf32>, vector<8x128xf32> -> vector<8x128xf32>
      %187 = arith.addf %183, %186 : vector<8x128xf32>
      %c1_148 = arith.constant 1 : index
      %c12_149 = arith.constant 12 : index
      %c0_150 = arith.constant 0 : index
      %188 = vector.load %arg2[%c1_148, %c12_149, %c0_150] : memref<4x16x128xf32, #tpu.memory_space<vmem>>, vector<1x4x128xf32>
      %189 = vector.shape_cast %188 : vector<1x4x128xf32> to vector<4x128xf32>
      %cst_151 = arith.constant dense<0.000000e+00> : vector<8x128xf32>
      %190 = tpu.matmul %40, %189, %cst_151 {dimension_numbers = #tpu.dot_dimension_numbers<[1], [0], [0], [1], [0, 0, 1, 1], [], []>} : vector<8x4xf32>, vector<4x128xf32>, vector<8x128xf32> -> vector<8x128xf32>
      %191 = arith.addf %187, %190 : vector<8x128xf32>
      %c2_152 = arith.constant 2 : index
      %c12_153 = arith.constant 12 : index
      %c0_154 = arith.constant 0 : index
      %192 = vector.load %arg2[%c2_152, %c12_153, %c0_154] : memref<4x16x128xf32, #tpu.memory_space<vmem>>, vector<1x4x128xf32>
      %193 = vector.shape_cast %192 : vector<1x4x128xf32> to vector<4x128xf32>
      %cst_155 = arith.constant dense<0.000000e+00> : vector<8x128xf32>
      %194 = tpu.matmul %42, %193, %cst_155 {dimension_numbers = #tpu.dot_dimension_numbers<[1], [0], [0], [1], [0, 0, 1, 1], [], []>} : vector<8x4xf32>, vector<4x128xf32>, vector<8x128xf32> -> vector<8x128xf32>
      %195 = arith.addf %191, %194 : vector<8x128xf32>
      %c3_156 = arith.constant 3 : index
      %c12_157 = arith.constant 12 : index
      %c0_158 = arith.constant 0 : index
      %196 = vector.load %arg2[%c3_156, %c12_157, %c0_158] : memref<4x16x128xf32, #tpu.memory_space<vmem>>, vector<1x4x128xf32>
      %197 = vector.shape_cast %196 : vector<1x4x128xf32> to vector<4x128xf32>
      %cst_159 = arith.constant dense<0.000000e+00> : vector<8x128xf32>
      %198 = tpu.matmul %44, %197, %cst_159 {dimension_numbers = #tpu.dot_dimension_numbers<[1], [0], [0], [1], [0, 0, 1, 1], [], []>} : vector<8x4xf32>, vector<4x128xf32>, vector<8x128xf32> -> vector<8x128xf32>
      %199 = arith.addf %195, %198 : vector<8x128xf32>
      %200 = arith.addf %199, %36 : vector<8x128xf32>
      %cst_160 = arith.constant 0.000000e+00 : f32
      %201 = vector.broadcast %cst_160 : f32 to vector<8x128xf32>
      %202 = arith.maximumf %200, %201 : vector<8x128xf32>
      %c6_161 = arith.constant 6 : index
      %c0_162 = arith.constant 0 : index
      %c0_163 = arith.constant 0 : index
      %203 = vector.load %arg6[%c6_161, %c0_162, %c0_163] : memref<7x8x128xf32, #tpu.memory_space<vmem>>, vector<1x8x128xf32>
      %204 = vector.shape_cast %203 : vector<1x8x128xf32> to vector<8x128xf32>
      %205 = vector.shape_cast %202 : vector<8x128xf32> to vector<1x8x128xf32>
      tpu.vector_store %arg6[%c6_161, %c0_162, %c0_163], %205 {strides = array<i32>} : memref<7x8x128xf32, #tpu.memory_space<vmem>>, vector<1x8x128xf32>,
    } else {
    }
    return
  }
  func.func @transform_0(%arg0: i32, %arg1: i32) -> (i32, i32, i32) {
    %c0_i32 = arith.constant 0 : i32
    %c0_i32_0 = arith.constant 0 : i32
    %c0_i32_1 = arith.constant 0 : i32
    return %c0_i32, %c0_i32_0, %arg1 : i32, i32, i32
  }
  func.func @transform_1(%arg0: i32, %arg1: i32) -> (i32, i32, i32) {
    %c0_i32 = arith.constant 0 : i32
    %c0_i32_0 = arith.constant 0 : i32
    %c0_i32_1 = arith.constant 0 : i32
    %c0_i32_2 = arith.constant 0 : i32
    return %c0_i32, %c0_i32_0, %c0_i32_1 : i32, i32, i32
  }
  func.func @transform_2(%arg0: i32, %arg1: i32) -> (i32, i32) {
    %c0_i32 = arith.constant 0 : i32
    %c0_i32_0 = arith.constant 0 : i32
    %c0_i32_1 = arith.constant 0 : i32
    return %c0_i32, %c0_i32_0 : i32, i32
  }
  func.func @transform_3(%arg0: i32, %arg1: i32) -> (i32, i32) {
    %c0_i32 = arith.constant 0 : i32
    %c0_i32_0 = arith.constant 0 : i32
    %c0_i32_1 = arith.constant 0 : i32
    return %c0_i32, %c0_i32_0 : i32, i32
  }
  func.func @transform_4(%arg0: i32, %arg1: i32) -> (i32, i32, i32) {
    %0 = arith.muli %arg0, %arg1 : i32
    %c0_i32 = arith.constant 0 : i32
    %c0_i32_0 = arith.constant 0 : i32
    %c0_i32_1 = arith.constant 0 : i32
    return %c0_i32, %c0_i32_0, %0 : i32, i32, i32
  }
}

</mosaic_0001>

<bundles_post_ra>
// kernel: tpu_custom_call.1
= control target key start
LH: loop header
LB: loop body
LE: loop exit
PB: predicated region body
PF: predicated region fallthrough
CT: control target
= control target key end

     0   :  { %9 = vsyncpa [#allocation5], 0  ;;  %s5966_s0 = inlined_call_operand.vmem [shape: f32[4,16,128], index: 0, kind: input, shape index: {}]   ;;  %s5967_s1 = inlined_call_operand.vmem [shape: f32[4,8,4], index: 1, kind: input, shape index: {}]   ;;  %s5968_s2 = inlined_call_operand.vmem [shape: f32[8,1], index: 2, kind: input, shape index: {}]   ;;  %s5969_s3 = inlined_call_operand.vmem [shape: f32[8,1], index: 3, kind: input, shape index: {}]   ;;  %s5970_s4 = inlined_call_operand.hbm [shape: f32[7,8,128], index: 4, kind: output, shape index: {}]  }
   0x1   :  { %11 = vsyncpa [#allocation5 + $0x1], 0  ;;  %s5354_s15 = smov 0   ;;  %s5356_s16 = smov 0  }
   0x2   :  { %s5358_s17 = smov 0  }
   0x3 LB: > { %s4610_s18 = sadd.s32 4294967295, %s5318_s17   ;;  %s4611_s19 = sadd.s32 4294967294, %s5318_s17   ;;  %s5318_s17 = sphi %s5358_s17, %s17_s17   ;;  %s5314_s16 = sphi %s5356_s16, %s5973_s16   ;;  %s5310_s15 = sphi %s5354_s15, %s5972_s15  }
   0x4   : > { %s29_s20 = sadd.s32 1, %s5314_s16  ;;  %p4614_p0 = scmp.ge.s32.totalorder %s5318_s17, 1 }
   0x5   : > { %p31_p1 = scmp.ge.s32.totalorder %s29_s20, 2  ;;  %p178_p2 = scmp.lt.s32.totalorder %s5318_s17, 3 }
   0x7   : > { %s5975_s20 = smov (%p31_p1, %s29_s20), 0  ;;  %p179_p3 = pnand %p4614_p0, %p178_p2 }
   0x8   : > { %p208_p4 = scmp.eq.s32.totalorder (!%p179_p3), %s5310_s15, 0 }
   0x9   : > { %182 = sbr.rel (%p179_p3) target bundleno = 938 (0x3aa), region = 36 }
  0x10   : > { %213 = sbr.rel (!%p208_p4) target bundleno = 23 (0x17), region = 40  ;;  %vm214_vm0 = vcmask (%p208_p4), 7168   ;;  %v5320_v0 = vmov (%p208_p4), 0.0  }
  0x11   : > { %215 = vst.msk [vmem:[#allocation2] sm:$0xff] (%p208_p4), %vm214_vm0, %v5320_v0  ;;  %216 = vst.msk [vmem:[#allocation3] sm:$0xff] (%p208_p4), %vm214_vm0, %v5320_v0 }
  0x17 PF: > { %v5380_v1 = vld [vmem:[%s5967_s1] sm:$0xff]  ;;  %v5385_v2 = vld [vmem:[%s5967_s1 + $0x8] sm:$0xff]  ;;  %v5390_v3 = vld [vmem:[%s5967_s1 + $0x10] sm:$0xff]  ;;  %p4619_p5 = scmp.ne.s32.totalorder %s5310_s15, 0 }
  0x18   : > { %v5395_v4 = vld [vmem:[%s5967_s1 + $0x18] sm:$0xff]  ;;  %v4620_v5 = vld [vmem:[%s5966_s0 + $0x10] sm:$0xf] (!%p4619_p5)  ;;  %vm234_vm1 = vcmask (!%p4619_p5), 1043456   ;;  %v5321_v6 = vmov (!%p4619_p5), 0.0   ;;  %vm230_vm2 = vcmask (!%p4619_p5), 31744  }
  0x19   : > { %226 = sbr.rel (%p4619_p5) target bundleno = 485 (0x1e5), region = 44  ;;  %4898 = vmatprep.subr.mxu1 (!%p4619_p5), %v5321_v6  ;;  %4908 = vmatprep.subr.mxu0 (!%p4619_p5), %v5321_v6  ;;  %v4625_v7 = vld [vmem:[%s5966_s0 + $0x20] sm:$0xf] (!%p4619_p5)  ;;  %vm5322_vm3 = vmmov (!%p4619_p5), 0   ;;  %v4628_v9 = vld [vmem:[%s5966_s0 + $0x30] sm:$0xf] (!%p4619_p5) }
  0x1a   : > { %4899 = vmatpush3.msk.msra.mxu1 (!%p4619_p5), %vm234_vm1, %v4620_v5  ;;  %4900 = vmatprep.mubr.msk.f32.mxu1 (!%p4619_p5), %vm5322_vm3, %v5321_v6  ;;  %v227_v8 = vld [vmem:[%s5966_s0] sm:$0xf] (!%p4619_p5)  ;;  %v4631_v10 = vld [vmem:[%s5966_s0 + $0x12] sm:$0xf] (!%p4619_p5)  ;;  %v846_v13 = vld [vmem:[%s5966_s0 + $0x4] sm:$0xf] (!%p4619_p5) }
  0x1b   : > { %4909 = vmatpush3.msk.msra.mxu0 (!%p4619_p5), %vm234_vm1, %v4625_v7  ;;  %4910 = vmatprep.mubr.msk.f32.mxu0 (!%p4619_p5), %vm5322_vm3, %v5321_v6  ;;  %v4642_v11 = vld [vmem:[%s5966_s0 + $0x14] sm:$0xf] (!%p4619_p5)  ;;  %v545_v12 = vld [vmem:[%s5966_s0 + $0x2] sm:$0xf] (!%p4619_p5)  ;;  %v4664_v19 = vld [vmem:[%s5966_s0 + $0x18] sm:$0xf] (!%p4619_p5) }
  0x1c   : > { %4901 = vmatmul.mubr.msk.f32.vlgmr.msra.gmra.mrb[0].mxu1 (!%p4619_p5), %vm230_vm2, %v5385_v2  ;;  %4903 = vmatprep.subr.mxu1 (!%p4619_p5), %v5321_v6  ;;  %v4636_v14 = vld [vmem:[%s5966_s0 + $0x22] sm:$0xf] (!%p4619_p5)  ;;  %v4639_v16 = vld [vmem:[%s5966_s0 + $0x32] sm:$0xf] (!%p4619_p5)  ;;  %v4653_v18 = vld [vmem:[%s5966_s0 + $0x16] sm:$0xf] (!%p4619_p5) }
  0x1d   : > { %4911 = vmatmul.mubr.msk.f32.vlgmr.msra.gmra.mrb[0].mxu0 (!%p4619_p5), %vm230_vm2, %v5390_v3  ;;  %4904 = vmatpush3.msk.msra.mxu1 (!%p4619_p5), %vm234_vm1, %v227_v8  ;;  %v4647_v15 = vld [vmem:[%s5966_s0 + $0x24] sm:$0xf] (!%p4619_p5)  ;;  %v4650_v17 = vld [vmem:[%s5966_s0 + $0x34] sm:$0xf] (!%p4619_p5)  ;;  %v1448_v21 = vld [vmem:[%s5966_s0 + $0x8] sm:$0xf] (!%p4619_p5) }
  0x1e   : > { %4913 = vmatprep.subr.mxu0 (!%p4619_p5), %v5321_v6  ;;  %4905 = vmatprep.mubr.msk.f32.mxu1 (!%p4619_p5), %vm5322_vm3, %v5321_v6  ;;  %v1147_v20 = vld [vmem:[%s5966_s0 + $0x6] sm:$0xf] (!%p4619_p5)  ;;  %v4661_v24 = vld [vmem:[%s5966_s0 + $0x36] sm:$0xf] (!%p4619_p5)  ;;  %v4675_v26 = vld [vmem:[%s5966_s0 + $0x1a] sm:$0xf] (!%p4619_p5) }
  0x1f   : > { %4914 = vmatpush3.msk.msra.mxu0 (!%p4619_p5), %vm234_vm1, %v4628_v9  ;;  %4915 = vmatprep.mubr.msk.f32.mxu0 (!%p4619_p5), %vm5322_vm3, %v5321_v6  ;;  %v4658_v22 = vld [vmem:[%s5966_s0 + $0x26] sm:$0xf] (!%p4619_p5)  ;;  %v4672_v25 = vld [vmem:[%s5966_s0 + $0x38] sm:$0xf] (!%p4619_p5)  ;;  %v4686_v27 = vld [vmem:[%s5966_s0 + $0x1c] sm:$0xf] (!%p4619_p5) }
  0x20   : > { %4918 = vmatprep.subr.mxu1 %v5321_v6  ;;  %4938 = vmatprep.subr.mxu0 %v5321_v6  ;;  %v4669_v23 = vld [vmem:[%s5966_s0 + $0x28] sm:$0xf]  ;;  %v2050_v29 = vld [vmem:[%s5966_s0 + $0xc] sm:$0xf]  ;;  %v4683_v32 = vld [vmem:[%s5966_s0 + $0x3a] sm:$0xf] }
  0x21   : > { %v1749_v28 = vld [vmem:[%s5966_s0 + $0xa] sm:$0xf]  ;;  %v4694_v33 = vld [vmem:[%s5966_s0 + $0x3c] sm:$0xf]  ;;  %vm2355_vm4 = vcmask 7168  }
  0x22   : > { %v4680_v30 = vld [vmem:[%s5966_s0 + $0x2a] sm:$0xf] }
  0x23   : > { %v4691_v31 = vld [vmem:[%s5966_s0 + $0x2c] sm:$0xf] }
  0x24   : > { %4906 = vmatmul.mubr.msk.f32.vlgmr.msra.gmra.mrb[0].mxu1 %vm230_vm2, %v5380_v1 }
  0x25   : > { %4916 = vmatmul.mubr.msk.f32.vlgmr.msra.gmra.mrb[0].mxu0 %vm230_vm2, %v5395_v4  ;;  %4919 = vmatpush3.msk.msra.mxu1 %vm234_vm1, %v4631_v10  ;;  %v2351_v10 = vld [vmem:[#allocation2] sm:$0xff] }
  0x26   : > { %4920 = vmatprep.mubr.msk.f32.mxu1 %vm5322_vm3, %v5321_v6  ;;  %4939 = vmatpush3.msk.msra.mxu0 %vm234_vm1, %v4642_v11 }
  0x27   : > { %4940 = vmatprep.mubr.msk.f32.mxu0 %vm5322_vm3, %v5321_v6  ;;  %4923 = vmatprep.subr.mxu1 %v5321_v6 }
  0x28   : > { %4921 = vmatmul.mubr.msk.f32.vlgmr.msra.gmra.mrb[2].mxu1 %vm230_vm2, %v5385_v2  ;;  %4943 = vmatprep.subr.mxu0 %v5321_v6 }
  0x29   : > { %4941 = vmatmul.mubr.msk.f32.vlgmr.msra.gmra.mrb[2].mxu0 %vm230_vm2, %v5385_v2  ;;  %4924 = vmatpush3.msk.msra.mxu1 %vm234_vm1, %v545_v12 }
  0x2a   : > { %4944 = vmatpush3.msk.msra.mxu0 %vm234_vm1, %v846_v13  ;;  %4925 = vmatprep.mubr.msk.f32.mxu1 %vm5322_vm3, %v5321_v6  ;;  %v2357_v13 = vld [vmem:[#allocation3] sm:$0xff] }
  0x2b   : > { %4945 = vmatprep.mubr.msk.f32.mxu0 %vm5322_vm3, %v5321_v6  ;;  %4928 = vmatprep.subr.mxu1 %v5321_v6 }
  0x2c   : > { %4948 = vmatprep.subr.mxu0 %v5321_v6 }
  0x30   : > { %4926 = vmatmul.mubr.msk.f32.vlgmr.msra.gmra.mrb[2].mxu1 %vm230_vm2, %v5380_v1 }
  0x31   : > { %4946 = vmatmul.mubr.msk.f32.vlgmr.msra.gmra.mrb[2].mxu0 %vm230_vm2, %v5380_v1  ;;  %4929 = vmatpush3.msk.msra.mxu1 %vm234_vm1, %v4636_v14 }
  0x32   : > { %4949 = vmatpush3.msk.msra.mxu0 %vm234_vm1, %v4647_v15  ;;  %4930 = vmatprep.mubr.msk.f32.mxu1 %vm5322_vm3, %v5321_v6 }
  0x33   : > { %4950 = vmatprep.mubr.msk.f32.mxu0 %vm5322_vm3, %v5321_v6  ;;  %4933 = vmatprep.subr.mxu1 %v5321_v6 }
  0x34   : > { %4953 = vmatprep.subr.mxu0 %v5321_v6 }
  0x38   : > { %4931 = vmatmul.mubr.msk.f32.vlgmr.msra.gmra.mrb[2].mxu1 %vm230_vm2, %v5390_v3 }
  0x39   : > { %4951 = vmatmul.mubr.msk.f32.vlgmr.msra.gmra.mrb[2].mxu0 %vm230_vm2, %v5390_v3  ;;  %4934 = vmatpush3.msk.msra.mxu1 %vm234_vm1, %v4639_v16 }
  0x3a   : > { %4954 = vmatpush3.msk.msra.mxu0 %vm234_vm1, %v4650_v17  ;;  %4935 = vmatprep.mubr.msk.f32.mxu1 %vm5322_vm3, %v5321_v6 }
  0x3b   : > { %4955 = vmatprep.mubr.msk.f32.mxu0 %vm5322_vm3, %v5321_v6  ;;  %4958 = vmatprep.subr.mxu1 %v5321_v6 }
  0x3c   : > { %4978 = vmatprep.subr.mxu0 %v5321_v6 }
  0x40   : > { %4936 = vmatmul.mubr.msk.f32.vlgmr.msra.gmra.mrb[2].mxu1 %vm230_vm2, %v5395_v4 }
  0x41   : > { %4956 = vmatmul.mubr.msk.f32.vlgmr.msra.gmra.mrb[2].mxu0 %vm230_vm2, %v5395_v4  ;;  %4959 = vmatpush3.msk.msra.mxu1 %vm234_vm1, %v4653_v18 }
  0x42   : > { %4960 = vmatprep.mubr.msk.f32.mxu1 %vm5322_vm3, %v5321_v6  ;;  %4979 = vmatpush3.msk.msra.mxu0 %vm234_vm1, %v4664_v19 }
  0x43   : > { %4980 = vmatprep.mubr.msk.f32.mxu0 %vm5322_vm3, %v5321_v6  ;;  %4963 = vmatprep.subr.mxu1 %v5321_v6 }
  0x44   : > { %4961 = vmatmul.mubr.msk.f32.vlgmr.msra.gmra.mrb[4].mxu1 %vm230_vm2, %v5385_v2  ;;  %4983 = vmatprep.subr.mxu0 %v5321_v6 }
  0x45   : > { %4981 = vmatmul.mubr.msk.f32.vlgmr.msra.gmra.mrb[4].mxu0 %vm230_vm2, %v5385_v2  ;;  %4964 = vmatpush3.msk.msra.mxu1 %vm234_vm1, %v1147_v20 }
  0x46   : > { %4984 = vmatpush3.msk.msra.mxu0 %vm234_vm1, %v1448_v21  ;;  %4965 = vmatprep.mubr.msk.f32.mxu1 %vm5322_vm3, %v5321_v6 }
  0x47   : > { %4985 = vmatprep.mubr.msk.f32.mxu0 %vm5322_vm3, %v5321_v6  ;;  %4968 = vmatprep.subr.mxu1 %v5321_v6 }
  0x48   : > { %4988 = vmatprep.subr.mxu0 %v5321_v6 }
  0x4c   : > { %4966 = vmatmul.mubr.msk.f32.vlgmr.msra.gmra.mrb[4].mxu1 %vm230_vm2, %v5380_v1 }
  0x4d   : > { %4986 = vmatmul.mubr.msk.f32.vlgmr.msra.gmra.mrb[4].mxu0 %vm230_vm2, %v5380_v1  ;;  %4969 = vmatpush3.msk.msra.mxu1 %vm234_vm1, %v4658_v22 }
  0x4e   : > { %4989 = vmatpush3.msk.msra.mxu0 %vm234_vm1, %v4669_v23  ;;  %4970 = vmatprep.mubr.msk.f32.mxu1 %vm5322_vm3, %v5321_v6 }
  0x4f   : > { %4990 = vmatprep.mubr.msk.f32.mxu0 %vm5322_vm3, %v5321_v6  ;;  %4973 = vmatprep.subr.mxu1 %v5321_v6 }
  0x50   : > { %4993 = vmatprep.subr.mxu0 %v5321_v6 }
  0x54   : > { %4971 = vmatmul.mubr.msk.f32.vlgmr.msra.gmra.mrb[4].mxu1 %vm230_vm2, %v5390_v3 }
  0x55   : > { %4991 = vmatmul.mubr.msk.f32.vlgmr.msra.gmra.mrb[4].mxu0 %vm230_vm2, %v5390_v3  ;;  %4974 = vmatpush3.msk.msra.mxu1 %vm234_vm1, %v4661_v24 }
  0x56   : > { %4994 = vmatpush3.msk.msra.mxu0 %vm234_vm1, %v4672_v25  ;;  %4975 = vmatprep.mubr.msk.f32.mxu1 %vm5322_vm3, %v5321_v6 }
  0x57   : > { %4995 = vmatprep.mubr.msk.f32.mxu0 %vm5322_vm3, %v5321_v6  ;;  %4998 = vmatprep.subr.mxu1 %v5321_v6 }
  0x58   : > { %5018 = vmatprep.subr.mxu0 %v5321_v6 }
  0x5c   : > { %4976 = vmatmul.mubr.msk.f32.vlgmr.msra.gmra.mrb[4].mxu1 %vm230_vm2, %v5395_v4 }
  0x5d   : > { %4996 = vmatmul.mubr.msk.f32.vlgmr.msra.gmra.mrb[4].mxu0 %vm230_vm2, %v5395_v4  ;;  %4999 = vmatpush3.msk.msra.mxu1 %vm234_vm1, %v4675_v26 }
  0x5e   : > { %5000 = vmatprep.mubr.msk.f32.mxu1 %vm5322_vm3, %v5321_v6  ;;  %5019 = vmatpush3.msk.msra.mxu0 %vm234_vm1, %v4686_v27 }
  0x5f   : > { %5020 = vmatprep.mubr.msk.f32.mxu0 %vm5322_vm3, %v5321_v6  ;;  %5003 = vmatprep.subr.mxu1 %v5321_v6 }
  0x60   : > { %5001 = vmatmul.mubr.msk.f32.vlgmr.msra.gmra.mrb[6].mxu1 %vm230_vm2, %v5385_v2  ;;  %5023 = vmatprep.subr.mxu0 %v5321_v6 }
  0x61   : > { %5021 = vmatmul.mubr.msk.f32.vlgmr.msra.gmra.mrb[6].mxu0 %vm230_vm2, %v5385_v2  ;;  %5004 = vmatpush3.msk.msra.mxu1 %vm234_vm1, %v1749_v28 }
  0x62   : > { %5024 = vmatpush3.msk.msra.mxu0 %vm234_vm1, %v2050_v29  ;;  %5005 = vmatprep.mubr.msk.f32.mxu1 %vm5322_vm3, %v5321_v6 }
  0x63   : > { %5025 = vmatprep.mubr.msk.f32.mxu0 %vm5322_vm3, %v5321_v6  ;;  %5008 = vmatprep.subr.mxu1 %v5321_v6 }
  0x64   : > { %5028 = vmatprep.subr.mxu0 %v5321_v6 }
  0x68   : > { %5006 = vmatmul.mubr.msk.f32.vlgmr.msra.gmra.mrb[6].mxu1 %vm230_vm2, %v5380_v1 }
  0x69   : > { %5026 = vmatmul.mubr.msk.f32.vlgmr.msra.gmra.mrb[6].mxu0 %vm230_vm2, %v5380_v1  ;;  %5009 = vmatpush3.msk.msra.mxu1 %vm234_vm1, %v4680_v30 }
  0x6a   : > { %5029 = vmatpush3.msk.msra.mxu0 %vm234_vm1, %v4691_v31  ;;  %5010 = vmatprep.mubr.msk.f32.mxu1 %vm5322_vm3, %v5321_v6 }
  0x6b   : > { %5030 = vmatprep.mubr.msk.f32.mxu0 %vm5322_vm3, %v5321_v6  ;;  %5013 = vmatprep.subr.mxu1 %v5321_v6 }
  0x6c   : > { %5033 = vmatprep.subr.mxu0 %v5321_v6 }
  0x70   : > { %5011 = vmatmul.mubr.msk.f32.vlgmr.msra.gmra.mrb[6].mxu1 %vm230_vm2, %v5390_v3 }
  0x71   : > { %5031 = vmatmul.mubr.msk.f32.vlgmr.msra.gmra.mrb[6].mxu0 %vm230_vm2, %v5390_v3  ;;  %5014 = vmatpush3.msk.msra.mxu1 %vm234_vm1, %v4683_v32 }
  0x72   : > { %5034 = vmatpush3.msk.msra.mxu0 %vm234_vm1, %v4694_v33  ;;  %5015 = vmatprep.mubr.msk.f32.mxu1 %vm5322_vm3, %v5321_v6 }
  0x73   : > { %5035 = vmatprep.mubr.msk.f32.mxu0 %vm5322_vm3, %v5321_v6 }
  0x78   : > { %5016 = vmatmul.mubr.msk.f32.vlgmr.msra.gmra.mrb[6].mxu1 %vm230_vm2, %v5395_v4 }
  0x79   : > { %5036 = vmatmul.mubr.msk.f32.vlgmr.msra.gmra.mrb[6].mxu0 %vm230_vm2, %v5395_v4 }
  0xf7   : > { %v380_v34 = vpop.f32.mrb[0].mxu1 }
  0xf8   : > { %v537_v35 = vpop.f32.mrb[0].mxu0  ;;  %v4907_v36 = vpop.f32.mrb[1].mxu1 }
  0xf9   : > { %v5178_v37 = vadd.f32 %v537_v35, %v380_v34  ;;  %v4917_v38 = vpop.f32.mrb[1].mxu0 }
  0xfb   : > { %v543_v40 = vmul.f32 %v5178_v37, %v5178_v37 }
 0x113   : > { %v838_v39 = vpop.f32.mrb[2].mxu1 }
 0x114   : > { %v843_v41 = vadd.f32 %v5178_v37, %v838_v39  ;;  %v844_v42 = vmul.f32 %v838_v39, %v838_v39  ;;  %v1139_v43 = vpop.f32.mrb[2].mxu0  ;;  %v4937_v44 = vpop.f32.mrb[3].mxu1 }
 0x115   : > { %v4957_v45 = vpop.f32.mrb[3].mxu0  ;;  %v1145_v48 = vmul.f32 %v1139_v43, %v1139_v43 }
 0x116   : > { %v845_v46 = vadd.f32 %v844_v42, %v543_v40  ;;  %v1144_v47 = vadd.f32 %v1139_v43, %v843_v41 }
 0x118   : > { %v1146_v49 = vadd.f32 %v1145_v48, %v845_v46 }
 0x12f   : > { %v1440_v50 = vpop.f32.mrb[4].mxu1 }
 0x130   : > { %v1445_v51 = vadd.f32 %v1440_v50, %v1144_v47  ;;  %v1446_v52 = vmul.f32 %v1440_v50, %v1440_v50  ;;  %v1741_v53 = vpop.f32.mrb[4].mxu0  ;;  %v4977_v54 = vpop.f32.mrb[5].mxu1 }
 0x131   : > { %v4997_v55 = vpop.f32.mrb[5].mxu0  ;;  %v1747_v58 = vmul.f32 %v1741_v53, %v1741_v53 }
 0x132   : > { %v1447_v56 = vadd.f32 %v1446_v52, %v1146_v49  ;;  %v1746_v57 = vadd.f32 %v1741_v53, %v1445_v51 }
 0x134   : > { %v1748_v59 = vadd.f32 %v1747_v58, %v1447_v56 }
 0x14b   : > { %v2042_v60 = vpop.f32.mrb[6].mxu1 }
 0x14c   : > { %v2047_v61 = vadd.f32 %v2042_v60, %v1746_v57  ;;  %v2048_v62 = vmul.f32 %v2042_v60, %v2042_v60  ;;  %v2343_v63 = vpop.f32.mrb[6].mxu0  ;;  %v5017_v0 = vpop.f32.mrb[7].mxu1 }
 0x14d   : > { %v5037_v5 = vpop.f32.mrb[7].mxu0  ;;  %v2349_v6 = vmul.f32 %v2343_v63, %v2343_v63 }
 0x14e   : > { %v2348_v7 = vadd.f32 %v2343_v63, %v2047_v61  ;;  %v2049_v8 = vadd.f32 %v2048_v62, %v1748_v59 }
 0x150   : > { %2352 = vadd.xlane.f32.xlu0 %v2348_v7  ;;  %v2350_v9 = vadd.f32 %v2349_v6, %v2049_v8 }
 0x154   : > { %2358 = vadd.xlane.f32.xlu0 %v2350_v9 }
 0x1dd   : > { %v2353_v11 = vpop.xlane.xlu0 %2352 }
 0x1de   : > { %v2354_v12 = vadd.f32 %v2353_v11, %v2351_v10 }
 0x1e0   : > { %2356 = vst.msk [vmem:[#allocation2] sm:$0xff] %vm2355_vm4, %v2354_v12 }
 0x1e1   : > { %v2359_v14 = vpop.xlane.xlu0 %2358 }
 0x1e2   : > { %v2360_v15 = vadd.f32 %v2359_v14, %v2357_v13 }
 0x1e4   : > { %2361 = vst.msk [vmem:[#allocation3] sm:$0xff] %vm2355_vm4, %v2360_v15 }
 0x1e5 PF: > { %p4697_p6 = scmp.ne.s32.totalorder %s5310_s15, 1 }
 0x1e6   : > { %v5323_v18 = vmov (!%p4697_p6), 0   ;;  %v5324_v21 = vmov (!%p4697_p6), 0.0   ;;  %v2372_v25 = vld [vmem:[%s5968_s2] sm:$0xff] (!%p4697_p6)  ;;  %v4698_v30 = vld [vmem:[%s5966_s0 + $0x10] sm:$0xf] (!%p4697_p6)  ;;  %vm2400_vm5 = vcmask (!%p4697_p6), 1043456  }
 0x1e7   : > { %2365 = sbr.rel (%p4697_p6) target bundleno = 914 (0x392), region = 48  ;;  %v2366_v16 = vld [vmem:[#allocation2] sm:$0xff] (!%p4697_p6)  ;;  %5263 = vset.pattern.permute.xlu0 (!%p4697_p6), %v5323_v18  ;;  %5038 = vmatprep.subr.mxu0 (!%p4697_p6), %v5324_v21  ;;  %vm5325_vm6 = vmmov (!%p4697_p6), 0   ;;  %vm2396_vm7 = vcmask (!%p4697_p6), 31744   ;;  %v4706_v37 = vld [vmem:[%s5966_s0 + $0x30] sm:$0xf] (!%p4697_p6) }
 0x1e8   : > { %v2367_v19 = vmul.f32 (!%p4697_p6), 0.004464286, %v2366_v16  ;;  %5043 = vmatprep.subr.mxu1 (!%p4697_p6), %v5324_v21  ;;  %v2376_v28 = vld [vmem:[%s5969_s3] sm:$0xff] (!%p4697_p6)  ;;  %5039 = vmatpush3.msk.msra.mxu0 (!%p4697_p6), %vm2400_vm5, %v4698_v30  ;;  %v4709_v38 = vld [vmem:[%s5966_s0 + $0x12] sm:$0xf] (!%p4697_p6) }
 0x1e9   : > { %v2393_v31 = vld [vmem:[%s5966_s0] sm:$0xf] (!%p4697_p6)  ;;  %5040 = vmatprep.mubr.msk.f32.mxu0 (!%p4697_p6), %vm5325_vm6, %v5324_v21  ;;  %5045 = vmatprep.mubr.msk.f32.mxu1 (!%p4697_p6), %vm5325_vm6, %v5324_v21  ;;  %v4721_v40 = vld [vmem:[%s5966_s0 + $0x14] sm:$0xf] (!%p4697_p6)  ;;  %v3013_v41 = vld [vmem:[%s5966_s0 + $0x4] sm:$0xf] (!%p4697_p6) }
 0x1ea   : > { %v2370_v22 = vmul.f32 (!%p4697_p6), %v2367_v19, %v2367_v19  ;;  %5044 = vmatpush3.msk.msra.mxu1 (!%p4697_p6), %vm2400_vm5, %v2393_v31  ;;  %5048 = vmatprep.subr.mxu0 (!%p4697_p6), %v5324_v21  ;;  %v4703_v36 = vld [vmem:[%s5966_s0 + $0x20] sm:$0xf] (!%p4697_p6)  ;;  %v4726_v42 = vld [vmem:[%s5966_s0 + $0x24] sm:$0xf] (!%p4697_p6)  ;;  %v4729_v43 = vld [vmem:[%s5966_s0 + $0x34] sm:$0xf] (!%p4697_p6) }
 0x1eb   : > { %v2368_v17 = vld [vmem:[#allocation3] sm:$0xff] (!%p4697_p6)  ;;  %5053 = vmatprep.subr.mxu1 (!%p4697_p6), %v5324_v21  ;;  %v2711_v39 = vld [vmem:[%s5966_s0 + $0x2] sm:$0xf] (!%p4697_p6)  ;;  %v4733_v44 = vld [vmem:[%s5966_s0 + $0x16] sm:$0xf] (!%p4697_p6) }
 0x1ec   : > { %v2369_v20 = vmul.f32 (!%p4697_p6), 0.004464286, %v2368_v17  ;;  %v3315_v45 = vld [vmem:[%s5966_s0 + $0x6] sm:$0xf] (!%p4697_p6)  ;;  %v4741_v47 = vld [vmem:[%s5966_s0 + $0x36] sm:$0xf] (!%p4697_p6) }
 0x1ed   : > { %v4738_v46 = vld [vmem:[%s5966_s0 + $0x26] sm:$0xf] (!%p4697_p6)  ;;  %v4745_v48 = vld [vmem:[%s5966_s0 + $0x18] sm:$0xf] (!%p4697_p6)  ;;  %v3919_v53 = vld [vmem:[%s5966_s0 + $0xa] sm:$0xf] (!%p4697_p6) }
 0x1ee   : > { %v2371_v23 = vsub.f32 %v2369_v20, %v2370_v22  ;;  %v3617_v49 = vld [vmem:[%s5966_s0 + $0x8] sm:$0xf]  ;;  %v4753_v51 = vld [vmem:[%s5966_s0 + $0x38] sm:$0xf]  ;;  %v4769_v56 = vld [vmem:[%s5966_s0 + $0x1c] sm:$0xf] }
 0x1ef   : > { %v4750_v50 = vld [vmem:[%s5966_s0 + $0x28] sm:$0xf]  ;;  %v4757_v52 = vld [vmem:[%s5966_s0 + $0x1a] sm:$0xf]  ;;  %v4221_v57 = vld [vmem:[%s5966_s0 + $0xc] sm:$0xf] }
 0x1f0   : > { %v2373_v24 = vadd.f32 1e-05, %v2371_v23  ;;  %v4762_v54 = vld [vmem:[%s5966_s0 + $0x2a] sm:$0xf]  ;;  %v4765_v55 = vld [vmem:[%s5966_s0 + $0x3a] sm:$0xf] }
 0x1f1   : > { %v4774_v58 = vld [vmem:[%s5966_s0 + $0x2c] sm:$0xf]  ;;  %v4777_v59 = vld [vmem:[%s5966_s0 + $0x3c] sm:$0xf] }
 0x1f2   : > { %5264 = vrsqrt.f32 %v2373_v24 }
 0x1fc   : > { %v5265_v26 = vpop.eup %5264 }
 0x1fd   : > { %v2375_v27 = vmul.f32 %v5265_v26, %v2372_v25 }
 0x1ff   : > { %2386 = vperm.xlu0 %5263, %v2375_v27   ;;  %v2377_v29 = vmul.f32 %v2375_v27, %v2367_v19 }
 0x201   : > { %v2378_v32 = vsub.f32 %v2376_v28, %v2377_v29 }
 0x203   : > { %2381 = vperm.xlu0 %5263, %v2378_v32  }
 0x27e   : > { %v2387_v33 = vpop.permute.xlu0 %2386 }
 0x27f   : > { %v5674_v34 = vmul.f32 %v2387_v33, %v5380_v1  ;;  %v5677_v35 = vmul.f32 %v5385_v2, %v2387_v33  ;;  %v5692_v1 = vmul.f32 %v5390_v3, %v2387_v33  ;;  %v5695_v2 = vmul.f32 %v5395_v4, %v2387_v33  ;;  %v4714_v3 = vld [vmem:[%s5966_s0 + $0x22] sm:$0xf]  ;;  %v4717_v4 = vld [vmem:[%s5966_s0 + $0x32] sm:$0xf] }
 0x281   : > { %5041 = vmatmul.mubr.msk.f32.vlgmr.msra.gmra.mrb[0].mxu0 %vm2396_vm7, %v5677_v35  ;;  %5046 = vmatmul.mubr.msk.f32.vlgmr.msra.gmra.mrb[0].mxu1 %vm2396_vm7, %v5674_v34 }
 0x282   : > { %5049 = vmatpush3.msk.msra.mxu0 %vm2400_vm5, %v4703_v36  ;;  %5054 = vmatpush3.msk.msra.mxu1 %vm2400_vm5, %v4706_v37  ;;  %v5921_v10 = vpop.permute.xlu0 %2381 }
 0x283   : > { %5050 = vmatprep.mubr.msk.f32.mxu0 %vm5325_vm6, %v5324_v21  ;;  %5055 = vmatprep.mubr.msk.f32.mxu1 %vm5325_vm6, %v5324_v21 }
 0x284   : > { %5058 = vmatprep.subr.mxu0 %v5324_v21  ;;  %5063 = vmatprep.subr.mxu1 %v5324_v21 }
 0x285   : > { %5051 = vmatmul.mubr.msk.f32.vlgmr.msra.gmra.mrb[2].mxu0 %vm2396_vm7, %v5692_v1  ;;  %5056 = vmatmul.mubr.msk.f32.vlgmr.msra.gmra.mrb[2].mxu1 %vm2396_vm7, %v5695_v2 }
 0x286   : > { %5059 = vmatpush3.msk.msra.mxu0 %vm2400_vm5, %v4709_v38  ;;  %5064 = vmatpush3.msk.msra.mxu1 %vm2400_vm5, %v2711_v39 }
 0x287   : > { %5060 = vmatprep.mubr.msk.f32.mxu0 %vm5325_vm6, %v5324_v21  ;;  %5065 = vmatprep.mubr.msk.f32.mxu1 %vm5325_vm6, %v5324_v21 }
 0x288   : > { %5068 = vmatprep.subr.mxu0 %v5324_v21  ;;  %5073 = vmatprep.subr.mxu1 %v5324_v21 }
 0x289   : > { %5061 = vmatmul.mubr.msk.f32.vlgmr.msra.gmra.mrb[4].mxu0 %vm2396_vm7, %v5677_v35  ;;  %5066 = vmatmul.mubr.msk.f32.vlgmr.msra.gmra.mrb[4].mxu1 %vm2396_vm7, %v5674_v34 }
 0x28a   : > { %5069 = vmatpush3.msk.msra.mxu0 %vm2400_vm5, %v4714_v3  ;;  %5074 = vmatpush3.msk.msra.mxu1 %vm2400_vm5, %v4717_v4 }
 0x28b   : > { %5070 = vmatprep.mubr.msk.f32.mxu0 %vm5325_vm6, %v5324_v21  ;;  %5075 = vmatprep.mubr.msk.f32.mxu1 %vm5325_vm6, %v5324_v21 }
 0x28c   : > { %5078 = vmatprep.subr.mxu0 %v5324_v21  ;;  %5083 = vmatprep.subr.mxu1 %v5324_v21 }
 0x28d   : > { %5071 = vmatmul.mubr.msk.f32.vlgmr.msra.gmra.mrb[6].mxu0 %vm2396_vm7, %v5692_v1  ;;  %5076 = vmatmul.mubr.msk.f32.vlgmr.msra.gmra.mrb[6].mxu1 %vm2396_vm7, %v5695_v2 }
 0x28e   : > { %5079 = vmatpush3.msk.msra.mxu0 %vm2400_vm5, %v4721_v40  ;;  %5084 = vmatpush3.msk.msra.mxu1 %vm2400_vm5, %v3013_v41 }
 0x28f   : > { %5080 = vmatprep.mubr.msk.f32.mxu0 %vm5325_vm6, %v5324_v21  ;;  %5085 = vmatprep.mubr.msk.f32.mxu1 %vm5325_vm6, %v5324_v21 }
 0x290   : > { %5088 = vmatprep.subr.mxu0 %v5324_v21  ;;  %5093 = vmatprep.subr.mxu1 %v5324_v21 }
 0x291   : > { %5081 = vmatmul.mubr.msk.f32.vlgmr.msra.gmra.mrb[8].mxu0 %vm2396_vm7, %v5677_v35  ;;  %5086 = vmatmul.mubr.msk.f32.vlgmr.msra.gmra.mrb[8].mxu1 %vm2396_vm7, %v5674_v34 }
 0x292   : > { %5089 = vmatpush3.msk.msra.mxu0 %vm2400_vm5, %v4726_v42  ;;  %5094 = vmatpush3.msk.msra.mxu1 %vm2400_vm5, %v4729_v43 }
 0x293   : > { %5090 = vmatprep.mubr.msk.f32.mxu0 %vm5325_vm6, %v5324_v21  ;;  %5095 = vmatprep.mubr.msk.f32.mxu1 %vm5325_vm6, %v5324_v21 }
 0x294   : > { %5098 = vmatprep.subr.mxu0 %v5324_v21  ;;  %5103 = vmatprep.subr.mxu1 %v5324_v21 }
 0x295   : > { %5091 = vmatmul.mubr.msk.f32.vlgmr.msra.gmra.mrb[10].mxu0 %vm2396_vm7, %v5692_v1  ;;  %5096 = vmatmul.mubr.msk.f32.vlgmr.msra.gmra.mrb[10].mxu1 %vm2396_vm7, %v5695_v2 }
 0x296   : > { %5099 = vmatpush3.msk.msra.mxu0 %vm2400_vm5, %v4733_v44  ;;  %5104 = vmatpush3.msk.msra.mxu1 %vm2400_vm5, %v3315_v45 }
 0x297   : > { %5100 = vmatprep.mubr.msk.f32.mxu0 %vm5325_vm6, %v5324_v21  ;;  %5105 = vmatprep.mubr.msk.f32.mxu1 %vm5325_vm6, %v5324_v21 }
 0x298   : > { %5108 = vmatprep.subr.mxu0 %v5324_v21  ;;  %5113 = vmatprep.subr.mxu1 %v5324_v21 }
 0x299   : > { %5101 = vmatmul.mubr.msk.f32.vlgmr.msra.gmra.mrb[12].mxu0 %vm2396_vm7, %v5677_v35  ;;  %5106 = vmatmul.mubr.msk.f32.vlgmr.msra.gmra.mrb[12].mxu1 %vm2396_vm7, %v5674_v34 }
 0x29a   : > { %5109 = vmatpush3.msk.msra.mxu0 %vm2400_vm5, %v4738_v46  ;;  %5114 = vmatpush3.msk.msra.mxu1 %vm2400_vm5, %v4741_v47 }
 0x29b   : > { %5110 = vmatprep.mubr.msk.f32.mxu0 %vm5325_vm6, %v5324_v21  ;;  %5115 = vmatprep.mubr.msk.f32.mxu1 %vm5325_vm6, %v5324_v21 }
 0x29c   : > { %5118 = vmatprep.subr.mxu0 %v5324_v21  ;;  %5123 = vmatprep.subr.mxu1 %v5324_v21 }
 0x29d   : > { %5111 = vmatmul.mubr.msk.f32.vlgmr.msra.gmra.mrb[14].mxu0 %vm2396_vm7, %v5692_v1  ;;  %5116 = vmatmul.mubr.msk.f32.vlgmr.msra.gmra.mrb[14].mxu1 %vm2396_vm7, %v5695_v2 }
 0x29e   : > { %5119 = vmatpush3.msk.msra.mxu0 %vm2400_vm5, %v4745_v48  ;;  %5124 = vmatpush3.msk.msra.mxu1 %vm2400_vm5, %v3617_v49 }
 0x29f   : > { %5120 = vmatprep.mubr.msk.f32.mxu0 %vm5325_vm6, %v5324_v21  ;;  %5125 = vmatprep.mubr.msk.f32.mxu1 %vm5325_vm6, %v5324_v21 }
 0x2a0   : > { %5128 = vmatprep.subr.mxu0 %v5324_v21  ;;  %5133 = vmatprep.subr.mxu1 %v5324_v21 }
 0x2a1   : > { %5121 = vmatmul.mubr.msk.f32.vlgmr.msra.gmra.mrb[16].mxu0 %vm2396_vm7, %v5677_v35  ;;  %5126 = vmatmul.mubr.msk.f32.vlgmr.msra.gmra.mrb[16].mxu1 %vm2396_vm7, %v5674_v34 }
 0x2a2   : > { %5129 = vmatpush3.msk.msra.mxu0 %vm2400_vm5, %v4750_v50  ;;  %5134 = vmatpush3.msk.msra.mxu1 %vm2400_vm5, %v4753_v51 }
 0x2a3   : > { %5130 = vmatprep.mubr.msk.f32.mxu0 %vm5325_vm6, %v5324_v21  ;;  %5135 = vmatprep.mubr.msk.f32.mxu1 %vm5325_vm6, %v5324_v21 }
 0x2a4   : > { %5138 = vmatprep.subr.mxu0 %v5324_v21  ;;  %5143 = vmatprep.subr.mxu1 %v5324_v21 }
 0x2a5   : > { %5131 = vmatmul.mubr.msk.f32.vlgmr.msra.gmra.mrb[18].mxu0 %vm2396_vm7, %v5692_v1  ;;  %5136 = vmatmul.mubr.msk.f32.vlgmr.msra.gmra.mrb[18].mxu1 %vm2396_vm7, %v5695_v2 }
 0x2a6   : > { %5139 = vmatpush3.msk.msra.mxu0 %vm2400_vm5, %v4757_v52  ;;  %5144 = vmatpush3.msk.msra.mxu1 %vm2400_vm5, %v3919_v53 }
 0x2a7   : > { %5140 = vmatprep.mubr.msk.f32.mxu0 %vm5325_vm6, %v5324_v21  ;;  %5145 = vmatprep.mubr.msk.f32.mxu1 %vm5325_vm6, %v5324_v21 }
 0x2a8   : > { %5148 = vmatprep.subr.mxu0 %v5324_v21  ;;  %5153 = vmatprep.subr.mxu1 %v5324_v21 }
 0x2a9   : > { %5141 = vmatmul.mubr.msk.f32.vlgmr.msra.gmra.mrb[20].mxu0 %vm2396_vm7, %v5677_v35  ;;  %5146 = vmatmul.mubr.msk.f32.vlgmr.msra.gmra.mrb[20].mxu1 %vm2396_vm7, %v5674_v34 }
 0x2aa   : > { %5149 = vmatpush3.msk.msra.mxu0 %vm2400_vm5, %v4762_v54  ;;  %5154 = vmatpush3.msk.msra.mxu1 %vm2400_vm5, %v4765_v55 }
 0x2ab   : > { %5150 = vmatprep.mubr.msk.f32.mxu0 %vm5325_vm6, %v5324_v21  ;;  %5155 = vmatprep.mubr.msk.f32.mxu1 %vm5325_vm6, %v5324_v21 }
 0x2ac   : > { %5158 = vmatprep.subr.mxu0 %v5324_v21  ;;  %5163 = vmatprep.subr.mxu1 %v5324_v21 }
 0x2ad   : > { %5151 = vmatmul.mubr.msk.f32.vlgmr.msra.gmra.mrb[22].mxu0 %vm2396_vm7, %v5692_v1  ;;  %5156 = vmatmul.mubr.msk.f32.vlgmr.msra.gmra.mrb[22].mxu1 %vm2396_vm7, %v5695_v2 }
 0x2ae   : > { %5159 = vmatpush3.msk.msra.mxu0 %vm2400_vm5, %v4769_v56  ;;  %5164 = vmatpush3.msk.msra.mxu1 %vm2400_vm5, %v4221_v57 }
 0x2af   : > { %5160 = vmatprep.mubr.msk.f32.mxu0 %vm5325_vm6, %v5324_v21  ;;  %5165 = vmatprep.mubr.msk.f32.mxu1 %vm5325_vm6, %v5324_v21 }
 0x2b0   : > { %5168 = vmatprep.subr.mxu0 %v5324_v21  ;;  %5173 = vmatprep.subr.mxu1 %v5324_v21 }
 0x2b1   : > { %5161 = vmatmul.mubr.msk.f32.vlgmr.msra.gmra.mrb[24].mxu0 %vm2396_vm7, %v5677_v35  ;;  %5166 = vmatmul.mubr.msk.f32.vlgmr.msra.gmra.mrb[24].mxu1 %vm2396_vm7, %v5674_v34 }
 0x2b2   : > { %5169 = vmatpush3.msk.msra.mxu0 %vm2400_vm5, %v4774_v58  ;;  %5174 = vmatpush3.msk.msra.mxu1 %vm2400_vm5, %v4777_v59 }
 0x2b3   : > { %5170 = vmatprep.mubr.msk.f32.mxu0 %vm5325_vm6, %v5324_v21  ;;  %5175 = vmatprep.mubr.msk.f32.mxu1 %vm5325_vm6, %v5324_v21 }
 0x2b5   : > { %5171 = vmatmul.mubr.msk.f32.vlgmr.msra.gmra.mrb[26].mxu0 %vm2396_vm7, %v5692_v1  ;;  %5176 = vmatmul.mubr.msk.f32.vlgmr.msra.gmra.mrb[26].mxu1 %vm2396_vm7, %v5695_v2 }
 0x354   : > { %v2470_v60 = vpop.f32.mrb[0].mxu0  ;;  %v2546_v61 = vpop.f32.mrb[0].mxu1 }
 0x355   : > { %v2547_v62 = vadd.f32 %v2546_v61, %v2470_v60  ;;  %v5042_v63 = vpop.f32.mrb[1].mxu0  ;;  %v5047_v0 = vpop.f32.mrb[1].mxu1 }
 0x358   : > { %v2624_v5 = vpop.f32.mrb[2].mxu0  ;;  %v2703_v6 = vpop.f32.mrb[2].mxu1 }
 0x359   : > { %v2628_v7 = vadd.f32 %v2624_v5, %v2547_v62  ;;  %v5052_v8 = vpop.f32.mrb[3].mxu0  ;;  %v5057_v9 = vpop.f32.mrb[3].mxu1 }
 0x35b   : > { %v2707_v11 = vadd.f32 %v2703_v6, %v2628_v7 }
 0x35c   : > { %v2782_v12 = vpop.f32.mrb[4].mxu0  ;;  %v2855_v13 = vpop.f32.mrb[4].mxu1 }
 0x35d   : > { %v2708_v14 = vadd.f32 %v2707_v11, %v5921_v10  ;;  %v2856_v15 = vadd.f32 %v2855_v13, %v2782_v12  ;;  %v5062_v16 = vpop.f32.mrb[5].mxu0  ;;  %v5067_v17 = vpop.f32.mrb[5].mxu1 }
 0x35f   : > { %v2709_v18 = vmax.f32 %v2708_v14, 0.0 }
 0x360   : > { %v2929_v19 = vpop.f32.mrb[6].mxu0  ;;  %v3004_v20 = vpop.f32.mrb[6].mxu1 }
 0x361   : > { %2710 = vst [vmem:[#allocation4] sm:$0xff] %v2709_v18  ;;  %v2933_v21 = vadd.f32 %v2929_v19, %v2856_v15  ;;  %v5072_v22 = vpop.f32.mrb[7].mxu0  ;;  %v5077_v23 = vpop.f32.mrb[7].mxu1 }
 0x363   : > { %v3008_v24 = vadd.f32 %v3004_v20, %v2933_v21 }
 0x364   : > { %v3084_v25 = vpop.f32.mrb[8].mxu0  ;;  %v3157_v26 = vpop.f32.mrb[8].mxu1 }
 0x365   : > { %v3009_v27 = vadd.f32 %v3008_v24, %v5921_v10  ;;  %v3158_v28 = vadd.f32 %v3157_v26, %v3084_v25  ;;  %v5082_v29 = vpop.f32.mrb[9].mxu0  ;;  %v5087_v30 = vpop.f32.mrb[9].mxu1 }
 0x367   : > { %v3010_v31 = vmax.f32 %v3009_v27, 0.0 }
 0x368   : > { %v3231_v32 = vpop.f32.mrb[10].mxu0  ;;  %v3306_v33 = vpop.f32.mrb[10].mxu1 }
 0x369   : > { %4720 = vst [vmem:[#allocation4 + $0x8] sm:$0xff] %v3010_v31  ;;  %v3235_v34 = vadd.f32 %v3231_v32, %v3158_v28  ;;  %v5092_v35 = vpop.f32.mrb[11].mxu0  ;;  %v5097_v36 = vpop.f32.mrb[11].mxu1 }
 0x36b   : > { %v3310_v37 = vadd.f32 %v3306_v33, %v3235_v34 }
 0x36c   : > { %v3386_v1 = vpop.f32.mrb[12].mxu0  ;;  %v3459_v2 = vpop.f32.mrb[12].mxu1 }
 0x36d   : > { %v3311_v38 = vadd.f32 %v3310_v37, %v5921_v10  ;;  %v3460_v39 = vadd.f32 %v3459_v2, %v3386_v1  ;;  %v5102_v3 = vpop.f32.mrb[13].mxu0  ;;  %v5107_v4 = vpop.f32.mrb[13].mxu1 }
 0x36f   : > { %v3312_v40 = vmax.f32 %v3311_v38, 0.0 }
 0x370   : > { %v3533_v41 = vpop.f32.mrb[14].mxu0  ;;  %v3608_v42 = vpop.f32.mrb[14].mxu1 }
 0x371   : > { %4732 = vst [vmem:[#allocation4 + $0x10] sm:$0xff] %v3312_v40  ;;  %v3537_v43 = vadd.f32 %v3533_v41, %v3460_v39  ;;  %v5112_v44 = vpop.f32.mrb[15].mxu0  ;;  %v5117_v45 = vpop.f32.mrb[15].mxu1 }
 0x373   : > { %v3612_v46 = vadd.f32 %v3608_v42, %v3537_v43 }
 0x374   : > { %v3688_v47 = vpop.f32.mrb[16].mxu0  ;;  %v3761_v48 = vpop.f32.mrb[16].mxu1 }
 0x375   : > { %v3613_v49 = vadd.f32 %v3612_v46, %v5921_v10  ;;  %v3762_v50 = vadd.f32 %v3761_v48, %v3688_v47  ;;  %v5122_v51 = vpop.f32.mrb[17].mxu0  ;;  %v5127_v52 = vpop.f32.mrb[17].mxu1 }
 0x377   : > { %v3614_v53 = vmax.f32 %v3613_v49, 0.0 }
 0x378   : > { %v3835_v54 = vpop.f32.mrb[18].mxu0  ;;  %v3910_v55 = vpop.f32.mrb[18].mxu1 }
 0x379   : > { %4744 = vst [vmem:[#allocation4 + $0x18] sm:$0xff] %v3614_v53  ;;  %v3839_v56 = vadd.f32 %v3835_v54, %v3762_v50  ;;  %v5132_v57 = vpop.f32.mrb[19].mxu0  ;;  %v5137_v58 = vpop.f32.mrb[19].mxu1 }
 0x37b   : > { %v3914_v59 = vadd.f32 %v3910_v55, %v3839_v56 }
 0x37c   : > { %v3990_v60 = vpop.f32.mrb[20].mxu0  ;;  %v4063_v61 = vpop.f32.mrb[20].mxu1 }
 0x37d   : > { %v3915_v62 = vadd.f32 %v3914_v59, %v5921_v10  ;;  %v4064_v63 = vadd.f32 %v4063_v61, %v3990_v60  ;;  %v5142_v0 = vpop.f32.mrb[21].mxu0  ;;  %v5147_v5 = vpop.f32.mrb[21].mxu1 }
 0x37f   : > { %v3916_v6 = vmax.f32 %v3915_v62, 0.0 }
 0x380   : > { %v4137_v7 = vpop.f32.mrb[22].mxu0  ;;  %v4212_v8 = vpop.f32.mrb[22].mxu1 }
 0x381   : > { %4756 = vst [vmem:[#allocation4 + $0x20] sm:$0xff] %v3916_v6  ;;  %v4141_v9 = vadd.f32 %v4137_v7, %v4064_v63  ;;  %v5152_v11 = vpop.f32.mrb[23].mxu0  ;;  %v5157_v12 = vpop.f32.mrb[23].mxu1 }
 0x383   : > { %v4216_v13 = vadd.f32 %v4212_v8, %v4141_v9 }
 0x384   : > { %v4292_v14 = vpop.f32.mrb[24].mxu0  ;;  %v4365_v15 = vpop.f32.mrb[24].mxu1 }
 0x385   : > { %v4217_v16 = vadd.f32 %v4216_v13, %v5921_v10  ;;  %v4366_v17 = vadd.f32 %v4365_v15, %v4292_v14  ;;  %v5162_v18 = vpop.f32.mrb[25].mxu0  ;;  %v5167_v19 = vpop.f32.mrb[25].mxu1 }
 0x387   : > { %v4218_v20 = vmax.f32 %v4217_v16, 0.0 }
 0x388   : > { %v4439_v21 = vpop.f32.mrb[26].mxu0  ;;  %v4514_v22 = vpop.f32.mrb[26].mxu1 }
 0x389   : > { %4768 = vst [vmem:[#allocation4 + $0x28] sm:$0xff] %v4218_v20  ;;  %v4443_v23 = vadd.f32 %v4439_v21, %v4366_v17  ;;  %v5172_v24 = vpop.f32.mrb[27].mxu0  ;;  %v5177_v25 = vpop.f32.mrb[27].mxu1 }
 0x38b   : > { %v4518_v26 = vadd.f32 %v4514_v22, %v4443_v23 }
 0x38d   : > { %v4519_v27 = vadd.f32 %v4518_v26, %v5921_v10 }
 0x38f   : > { %v4520_v28 = vmax.f32 %v4519_v27, 0.0 }
 0x391   : > { %4780 = vst [vmem:[#allocation4 + $0x30] sm:$0xff] %v4520_v28 }
 0x392 PF: > { %p5932_p7 = scmp.eq.s32.totalorder %s4610_s18, 1  ;;  %s5326_s23 = smov [#allocation4]  }
 0x393   : > { %s4537_s24 = sshll.u32 %s5326_s23, 4  ;;  %s4538_s24 = int_to_ptr.vmem [resolvable:$true] %s4537_s24 }
 0x394   : > { %s5266_s25 = scalar_lea.vmem %s4538_s24, 896  ;;  %s5272_s26 = scalar_lea.vmem %s4538_s24, 1792 }
 0x395   : > { %p5267_p8 = scmp.ne.s32.totalorder %s4538_s24, %s5266_s25  ;;  %p5273_p11 = scmp.lt.s32.totalorder %s4538_s24, %s4538_s24 }
 0x396   : > { %p5274_p12 = scmp.lt.s32.totalorder %s5272_s26, %s5266_s25 }
 0x397   : > { %p5268_p9 = pnand %p5267_p8, %p5932_p7 }
 0x398   : > { %p5275_p13 = por %p5274_p12, %p5273_p11 }
 0x399   : > { %p5269_p10 = pneg %p5268_p9 }
 0x39b   : > { %p5276_p0 = pnand %p5275_p13, %p5269_p10 }
 0x39d   : > { %5279 = shalt.err (!%p5276_p0)
}
 0x39e   : > { %s5280_s27 = scalar_lea.hbm %s5970_s4, 896 }
 0x39f   : > { %p5281_p1 = scmp.ne.s32.totalorder %s5970_s4, %s5280_s27  ;;  %p5286_p4 = scmp.lt.u32.totalorder %s5280_s27, %s5970_s4 }
 0x3a1   : > { %p5282_p2 = pnand %p5281_p1, %p5932_p7 }
 0x3a3   : > { %p5283_p3 = pneg %p5282_p2 }
 0x3a5   : > { %p5288_p5 = pnand %p5286_p4, %p5283_p3 }
 0x3a7   : > { %5291 = shalt.err (!%p5288_p5)
}
 0x3a8   : > { %s5327_s6 = smov 128   ;;  %s5328_s7 = smov 8  }
 0x3a9   : > { %5220 = dma.vmem_to_hbm [thread:$0]  (%p5932_p7), %s4538_s24, 896, %s5970_s4, [#allocation5], %s5327_s6, %s5327_s6, %s5328_s7  }
 0x3aa PF: > { %p5228_p6 = scmp.ge.s32.totalorder %s5318_s17, 2  ;;  %p5229_p8 = scmp.eq.s32.totalorder %s4611_s19, 1 }
 0x3ac   : > { %p5224_p9 = pnand %p5229_p8, %p5228_p6 }
 0x3ae   : > { %5305 = dma.done.wait (!%p5224_p9), [#allocation5], 896  }
 0x3af   : > { %5307 = vsyncadd (!%p5224_p9), [#allocation5], 4294966400  ;;  %s17_s17 = sadd.s32 1, %s5318_s17   ;;  %s5972_s15 = smov %s5314_s16 }
 0x3b0   : > { %p14_p10 = scmp.ge.s32.totalorder %s17_s17, 4   ;;  %s5973_s16 = smov %s5975_s20 }
 0x3b2   :  { %16 = sbr.rel (!%p14_p10) target bundleno = 3 (0x3), region = 98 }
 0x3b9   :  { %4558 = vsyncpa [#allocation5], 1 }
 0x3ba   :  { %4560 = vsyncpa [#allocation5 + $0x1], 1 }

</bundles_post_ra>
